<compile_context>
chip_gen: v7x
topology: tpu7x:2x2x1
jax: 0.10.0
libtpu: 0.0.40
codegen_flags: <defaults>
</compile_context>

<pallas_src>
import jax
import jax.numpy as jnp
from jax import lax
from jax.experimental import pallas as pl
from jax.experimental.pallas import tpu as pltpu


# ----------------------------------------------------------------------------
# Pass 1: fused pad + strided conv + per-channel batch statistics
# ----------------------------------------------------------------------------
def _make_conv_stats_kernel(H, W, Cin, Cout, KH, KW, stride, padding, Ho, Wo):
    Hp, Wp = H + 2 * padding, W + 2 * padding
    HoWo = Ho * Wo
    K = KH * KW * Cin

    def kernel(x_ref, w_ref, y_ref, sum_ref, ssq_ref, xp_ref, patch_ref):
        n = pl.program_id(0)

        @pl.when(n == 0)
        def _init_stats():
            sum_ref[...] = jnp.zeros_like(sum_ref)
            ssq_ref[...] = jnp.zeros_like(ssq_ref)

        if padding > 0:
            # Zero the padded scratch ONCE: the border ring stays zero across
            # the sequential ("arbitrary") grid; the interior is overwritten
            # below every step.
            @pl.when(n == 0)
            def _zero_border():
                xp_ref[...] = jnp.zeros((Hp, Wp, Cin), jnp.float32)

        # interior copy (fused padding)
        xp_ref[padding:padding + H, padding:padding + W, :] = x_ref[0]

        # im2col into a reused VMEM scratch: one store per tap (no value-level
        # concatenate of Cin-wide slices).
        t = 0
        for kh in range(KH):
            for kw in range(KW):
                if stride == 1:
                    tap = xp_ref[kh:kh + Ho, kw:kw + Wo, :]
                else:
                    # strided output positions read directly (no dense compute)
                    tap = xp_ref[pl.ds(kh, Ho, stride), pl.ds(kw, Wo, stride), :]
                patch_ref[:, :, t * Cin:(t + 1) * Cin] = tap       # (Ho,Wo,Cin)
                t += 1

        patches = patch_ref[...].reshape(HoWo, K)                  # (HoWo, K)

        # (Cout, K) contracted with (HoWo, K) along K -> (Cout, HoWo): result
        # lands directly in channel-major, lane-dense layout (no transpose).
        y = lax.dot_general(w_ref[...], patches,
                            dimension_numbers=(((1,), (1,)), ((), ())),
                            preferred_element_type=jnp.float32)    # (Cout,HoWo)
        y_ref[0] = y

        # BN batch statistics: reduce along the lane (spatial) axis, accumulate
        # into the resident (constant-index) stats output blocks.
        sum_ref[...] += jnp.sum(y, axis=1, keepdims=True)          # (Cout, 1)
        ssq_ref[...] += jnp.sum(y * y, axis=1, keepdims=True)      # (Cout, 1)

    return kernel


# ----------------------------------------------------------------------------
# Pass 2: streamed BN apply (single scale + shift per channel)
# ----------------------------------------------------------------------------
def _bn_apply_kernel(y_ref, scale_ref, shift_ref, o_ref):
    o_ref[...] = y_ref[...] * scale_ref[...][None] + shift_ref[...][None]


# ----------------------------------------------------------------------------
# Wrapper
# ----------------------------------------------------------------------------
def conv_block_forward(x_nchw, w_oihw, gamma, beta, *, stride, padding,
                       eps=1e-5):
    """Fused Conv2d (bias-free: it cancels under training BN) + BatchNorm2d."""
    N, Cin, H, W = x_nchw.shape
    Cout, _, KH, KW = w_oihw.shape
    Ho = (H + 2 * padding - KH) // stride + 1
    Wo = (W + 2 * padding - KW) // stride + 1
    HoWo = Ho * Wo
    K = KH * KW * Cin

    # Boundary-layout glue only: NCHW -> NHWC input; weight (O,I,KH,KW) ->
    # (Cout, K) with K ordered (kh, kw, cin) to match the in-kernel tap loop.
    x_nhwc = jnp.transpose(x_nchw, (0, 2, 3, 1)).astype(jnp.float32)
    w_cok = jnp.transpose(w_oihw, (0, 2, 3, 1)).reshape(Cout, K).astype(
        jnp.float32)

    conv_kernel = _make_conv_stats_kernel(H, W, Cin, Cout, KH, KW, stride,
                                          padding, Ho, Wo)
    y, s_sum, s_ssq = pl.pallas_call(
        conv_kernel,
        out_shape=(jax.ShapeDtypeStruct((N, Cout, HoWo), jnp.float32),
                   jax.ShapeDtypeStruct((Cout, 1), jnp.float32),
                   jax.ShapeDtypeStruct((Cout, 1), jnp.float32)),
        grid_spec=pltpu.PrefetchScalarGridSpec(
            num_scalar_prefetch=0,
            grid=(N,),
            in_specs=[
                pl.BlockSpec((1, H, W, Cin), lambda n: (n, 0, 0, 0)),
                pl.BlockSpec((Cout, K), lambda n: (0, 0)),
            ],
            out_specs=[
                # conv result streams out per grid step (not resident)
                pl.BlockSpec((1, Cout, HoWo), lambda n: (n, 0, 0)),
                # per-channel stats stay resident across the batch axis
                pl.BlockSpec((Cout, 1), lambda n: (0, 0)),
                pl.BlockSpec((Cout, 1), lambda n: (0, 0)),
            ],
            scratch_shapes=[
                pltpu.VMEM((H + 2 * padding, W + 2 * padding, Cin),
                           jnp.float32),                 # padded input
                pltpu.VMEM((Ho, Wo, K), jnp.float32),    # im2col patches
            ],
        ),
        # batch axis must be "arbitrary": stats accumulate across it and the
        # padded scratch border is zeroed only at n == 0.
        compiler_params=pltpu.CompilerParams(
            dimension_semantics=("arbitrary",)),
    )(x_nhwc, w_cok)

    # Fold BN into one per-channel scale + shift (tiny, Cout elements).
    inv_count = 1.0 / float(N * HoWo)
    mean = s_sum[:, 0] * inv_count
    var = jnp.maximum(s_ssq[:, 0] * inv_count - mean * mean, 0.0)
    scale = gamma.astype(jnp.float32) * lax.rsqrt(var + eps)        # (Cout,)
    shift = beta.astype(jnp.float32) - mean * scale                  # (Cout,)
    scale_col = scale.reshape(Cout, 1)
    shift_col = shift.reshape(Cout, 1)

    out = pl.pallas_call(
        _bn_apply_kernel,
        out_shape=jax.ShapeDtypeStruct((N, Cout, HoWo), jnp.float32),
        grid_spec=pltpu.PrefetchScalarGridSpec(
            num_scalar_prefetch=0,
            grid=(N,),
            in_specs=[
                pl.BlockSpec((1, Cout, HoWo), lambda n: (n, 0, 0)),
                pl.BlockSpec((Cout, 1), lambda n: (0, 0)),
                pl.BlockSpec((Cout, 1), lambda n: (0, 0)),
            ],
            out_specs=pl.BlockSpec((1, Cout, HoWo), lambda n: (n, 0, 0)),
        ),
        # no cross-step state: safe to shard across cores
        compiler_params=pltpu.CompilerParams(
            dimension_semantics=("parallel",)),
    )(y, scale_col, shift_col)

    # output is already channel-major: reshape to NCHW is free
    return out.reshape(N, Cout, Ho, Wo)


# ----------------------------------------------------------------------------
# Module wrapper (mirrors the PyTorch ConvBlock parameters)
# ----------------------------------------------------------------------------
class ConvBlockPallas:
    """Pallas port of ResCDNet34 ConvBlock: Conv2d(+bias) -> BatchNorm2d.

    A freshly constructed PyTorch module is in .train() mode, so BatchNorm uses
    per-channel batch statistics (biased variance, eps=1e-5).  The conv bias is
    kept as a parameter (to mirror the module) but not fed to the kernel: under
    training-mode BN it cancels exactly in the mean subtraction.
    """
    # TODO(synk): BatchNorm running_mean/running_var (momentum) buffer updates
    # are a training-time side effect that does not affect the forward output;
    # not implemented.

    def __init__(self, in_channels, out_channels, kernel_size, stride, padding,
                 key):
        self.stride, self.padding = stride, padding
        kw_, kb_, kg_, kbe_ = jax.random.split(key, 4)
        self.w = 0.1 * jax.random.normal(
            kw_, (out_channels, in_channels, kernel_size, kernel_size),
            jnp.float32)
        self.bias = 0.1 * jax.random.normal(kb_, (out_channels,), jnp.float32)
        self.gamma = 1.0 + 0.1 * jax.random.normal(kg_, (out_channels,),
                                                   jnp.float32)
        self.beta = 0.1 * jax.random.normal(kbe_, (out_channels,), jnp.float32)

    def __call__(self, x_nchw):
        return conv_block_forward(x_nchw, self.w, self.gamma, self.beta,
                                  stride=self.stride, padding=self.padding)


# ----------------------------------------------------------------------------
# Pure-JAX reference (PyTorch semantics, including the conv bias)
# ----------------------------------------------------------------------------
def ref_convblock(x_nchw, w_oihw, bias, gamma, beta, stride, padding, eps=1e-5):
    y = lax.conv_general_dilated(
        x_nchw, w_oihw, (stride, stride),
        [(padding, padding), (padding, padding)],
        dimension_numbers=("NCHW", "OIHW", "NCHW"),
        precision=lax.Precision.HIGHEST)
    y = y + bias.reshape(1, -1, 1, 1)
    mean = jnp.mean(y, axis=(0, 2, 3), keepdims=True)
    var = jnp.mean((y - mean) ** 2, axis=(0, 2, 3), keepdims=True)
    return (gamma.reshape(1, -1, 1, 1) * (y - mean) * lax.rsqrt(var + eps)
            + beta.reshape(1, -1, 1, 1))


# ----------------------------------------------------------------------------
if __name__ == "__main__":
    root = jax.random.PRNGKey(0)
    kx, k1, k2, k3 = jax.random.split(root, 4)
    x = jax.random.normal(kx, (2, 4, 16, 16), jnp.float32)   # NCHW, as PyTorch

    # (out_channels, kernel_size, stride, padding): the ConvBlock configs used
    # inside ResCDNet34 (3x3 s1, 3x3 s2 downsample, 1x1 s2 projection).
    configs = [(8, 3, 1, 1), (8, 3, 2, 1), (8, 1, 2, 0)]
    for cfg, kk in zip(configs, (k1, k2, k3)):
        cout, ks, st, pad = cfg
        block = ConvBlockPallas(4, cout, ks, st, pad, kk)

        out = jax.block_until_ready(block(x))
        ref = jax.block_until_ready(
            ref_convblock(x, block.w, block.bias, block.gamma, block.beta,
                          st, pad))

        assert out.shape == ref.shape, (cfg, out.shape, ref.shape)
        err = float(jnp.max(jnp.abs(out - ref)))
        assert jnp.allclose(out, ref, rtol=2e-4, atol=2e-4), (cfg, err)

    print("KERNEL_OK")
</pallas_src>

<mosaic_0001>
module attributes {stable_mosaic.version = 11 : i64} {
  func.func @kernel(%arg0: i32, %arg1: memref<1x16x16x4xf32, #tpu.memory_space<vmem>>, %arg2: memref<8x36xf32, #tpu.memory_space<vmem>>, %arg3: memref<1x8x256xf32, #tpu.memory_space<vmem>>, %arg4: memref<8x1xf32, #tpu.memory_space<vmem>>, %arg5: memref<8x1xf32, #tpu.memory_space<vmem>>, %arg6: memref<18x18x4xf32, #tpu.memory_space<vmem>>, %arg7: memref<16x16x36xf32, #tpu.memory_space<vmem>>) attributes {dimension_semantics = [#tpu.dimension_semantics<arbitrary>], iteration_bounds = array<i64: 2>, scalar_prefetch = 0 : i64, scratch_operands = 2 : i64, tpu.core_type = #tpu.core_type<tc>, window_params = [{transform_indices = @transform_0, window_bounds = array<i64: 1, 16, 16, 4>}, {pipeline_mode = #tpu.pipeline_mode<synchronous>, transform_indices = @transform_1, window_bounds = array<i64: 8, 36>}, {transform_indices = @transform_2, window_bounds = array<i64: 1, 8, 256>}, {pipeline_mode = #tpu.pipeline_mode<synchronous>, transform_indices = @transform_3, window_bounds = array<i64: 8, 1>}, {pipeline_mode = #tpu.pipeline_mode<synchronous>, transform_indices = @transform_4, window_bounds = array<i64: 8, 1>}]} {
    %c0_i32 = arith.constant 0 : i32
    %0 = arith.cmpi eq, %arg0, %c0_i32 : i32
    %1 = arith.extui %0 : i1 to i32
    %c0_i32_0 = arith.constant 0 : i32
    %2 = arith.cmpi ne, %1, %c0_i32_0 : i32
    scf.if %2 {
      %cst_71 = arith.constant 0.000000e+00 : f32
      %45 = vector.broadcast %cst_71 : f32 to vector<8x1xf32>
      %c0_72 = arith.constant 0 : index
      %c0_73 = arith.constant 0 : index
      %46 = vector.load %arg4[%c0_72, %c0_73] : memref<8x1xf32, #tpu.memory_space<vmem>>, vector<8x1xf32>
      tpu.vector_store %arg4[%c0_72, %c0_73], %45 {strides = array<i32>} : memref<8x1xf32, #tpu.memory_space<vmem>>, vector<8x1xf32>,
      %cst_74 = arith.constant 0.000000e+00 : f32
      %47 = vector.broadcast %cst_74 : f32 to vector<8x1xf32>
      %c0_75 = arith.constant 0 : index
      %c0_76 = arith.constant 0 : index
      %48 = vector.load %arg5[%c0_75, %c0_76] : memref<8x1xf32, #tpu.memory_space<vmem>>, vector<8x1xf32>
      tpu.vector_store %arg5[%c0_75, %c0_76], %47 {strides = array<i32>} : memref<8x1xf32, #tpu.memory_space<vmem>>, vector<8x1xf32>,
    } else {
    }
    %c0_i32_1 = arith.constant 0 : i32
    %3 = arith.cmpi eq, %arg0, %c0_i32_1 : i32
    %4 = arith.extui %3 : i1 to i32
    %c0_i32_2 = arith.constant 0 : i32
    %5 = arith.cmpi ne, %4, %c0_i32_2 : i32
    scf.if %5 {
      %cst_71 = arith.constant 0.000000e+00 : f32
      %45 = vector.broadcast %cst_71 : f32 to vector<18x18x4xf32>
      %c0_72 = arith.constant 0 : index
      %c0_73 = arith.constant 0 : index
      %c0_74 = arith.constant 0 : index
      %46 = vector.load %arg6[%c0_72, %c0_73, %c0_74] : memref<18x18x4xf32, #tpu.memory_space<vmem>>, vector<18x18x4xf32>
      tpu.vector_store %arg6[%c0_72, %c0_73, %c0_74], %45 {strides = array<i32>} : memref<18x18x4xf32, #tpu.memory_space<vmem>>, vector<18x18x4xf32>,
    } else {
    }
    %c0 = arith.constant 0 : index
    %c0_3 = arith.constant 0 : index
    %c0_4 = arith.constant 0 : index
    %c0_5 = arith.constant 0 : index
    %6 = vector.load %arg1[%c0, %c0_3, %c0_4, %c0_5] : memref<1x16x16x4xf32, #tpu.memory_space<vmem>>, vector<1x16x16x4xf32>
    %7 = vector.shape_cast %6 : vector<1x16x16x4xf32> to vector<16x16x4xf32>
    %c1 = arith.constant 1 : index
    %c1_6 = arith.constant 1 : index
    %c0_7 = arith.constant 0 : index
    %8 = vector.load %arg6[%c1, %c1_6, %c0_7] : memref<18x18x4xf32, #tpu.memory_space<vmem>>, vector<16x16x4xf32>
    tpu.vector_store %arg6[%c1, %c1_6, %c0_7], %7 {strides = array<i32>} : memref<18x18x4xf32, #tpu.memory_space<vmem>>, vector<16x16x4xf32>,
    %c0_8 = arith.constant 0 : index
    %c0_9 = arith.constant 0 : index
    %c0_10 = arith.constant 0 : index
    %9 = vector.load %arg6[%c0_8, %c0_9, %c0_10] : memref<18x18x4xf32, #tpu.memory_space<vmem>>, vector<16x16x4xf32>
    %c0_11 = arith.constant 0 : index
    %c0_12 = arith.constant 0 : index
    %c0_13 = arith.constant 0 : index
    %10 = vector.load %arg7[%c0_11, %c0_12, %c0_13] : memref<16x16x36xf32, #tpu.memory_space<vmem>>, vector<16x16x4xf32>
    tpu.vector_store %arg7[%c0_11, %c0_12, %c0_13], %9 {strides = array<i32>} : memref<16x16x36xf32, #tpu.memory_space<vmem>>, vector<16x16x4xf32>,
    %c0_14 = arith.constant 0 : index
    %c1_15 = arith.constant 1 : index
    %c0_16 = arith.constant 0 : index
    %11 = vector.load %arg6[%c0_14, %c1_15, %c0_16] : memref<18x18x4xf32, #tpu.memory_space<vmem>>, vector<16x16x4xf32>
    %c0_17 = arith.constant 0 : index
    %c0_18 = arith.constant 0 : index
    %c4 = arith.constant 4 : index
    %12 = vector.load %arg7[%c0_17, %c0_18, %c4] : memref<16x16x36xf32, #tpu.memory_space<vmem>>, vector<16x16x4xf32>
    tpu.vector_store %arg7[%c0_17, %c0_18, %c4], %11 {strides = array<i32>} : memref<16x16x36xf32, #tpu.memory_space<vmem>>, vector<16x16x4xf32>,
    %c0_19 = arith.constant 0 : index
    %c2 = arith.constant 2 : index
    %c0_20 = arith.constant 0 : index
    %13 = vector.load %arg6[%c0_19, %c2, %c0_20] : memref<18x18x4xf32, #tpu.memory_space<vmem>>, vector<16x16x4xf32>
    %c0_21 = arith.constant 0 : index
    %c0_22 = arith.constant 0 : index
    %c8 = arith.constant 8 : index
    %14 = vector.load %arg7[%c0_21, %c0_22, %c8] : memref<16x16x36xf32, #tpu.memory_space<vmem>>, vector<16x16x4xf32>
    tpu.vector_store %arg7[%c0_21, %c0_22, %c8], %13 {strides = array<i32>} : memref<16x16x36xf32, #tpu.memory_space<vmem>>, vector<16x16x4xf32>,
    %c1_23 = arith.constant 1 : index
    %c0_24 = arith.constant 0 : index
    %c0_25 = arith.constant 0 : index
    %15 = vector.load %arg6[%c1_23, %c0_24, %c0_25] : memref<18x18x4xf32, #tpu.memory_space<vmem>>, vector<16x16x4xf32>
    %c0_26 = arith.constant 0 : index
    %c0_27 = arith.constant 0 : index
    %c12 = arith.constant 12 : index
    %16 = vector.load %arg7[%c0_26, %c0_27, %c12] : memref<16x16x36xf32, #tpu.memory_space<vmem>>, vector<16x16x4xf32>
    tpu.vector_store %arg7[%c0_26, %c0_27, %c12], %15 {strides = array<i32>} : memref<16x16x36xf32, #tpu.memory_space<vmem>>, vector<16x16x4xf32>,
    %c1_28 = arith.constant 1 : index
    %c1_29 = arith.constant 1 : index
    %c0_30 = arith.constant 0 : index
    %17 = vector.load %arg6[%c1_28, %c1_29, %c0_30] : memref<18x18x4xf32, #tpu.memory_space<vmem>>, vector<16x16x4xf32>
    %c0_31 = arith.constant 0 : index
    %c0_32 = arith.constant 0 : index
    %c16 = arith.constant 16 : index
    %18 = vector.load %arg7[%c0_31, %c0_32, %c16] : memref<16x16x36xf32, #tpu.memory_space<vmem>>, vector<16x16x4xf32>
    tpu.vector_store %arg7[%c0_31, %c0_32, %c16], %17 {strides = array<i32>} : memref<16x16x36xf32, #tpu.memory_space<vmem>>, vector<16x16x4xf32>,
    %c1_33 = arith.constant 1 : index
    %c2_34 = arith.constant 2 : index
    %c0_35 = arith.constant 0 : index
    %19 = vector.load %arg6[%c1_33, %c2_34, %c0_35] : memref<18x18x4xf32, #tpu.memory_space<vmem>>, vector<16x16x4xf32>
    %c0_36 = arith.constant 0 : index
    %c0_37 = arith.constant 0 : index
    %c20 = arith.constant 20 : index
    %20 = vector.load %arg7[%c0_36, %c0_37, %c20] : memref<16x16x36xf32, #tpu.memory_space<vmem>>, vector<16x16x4xf32>
    tpu.vector_store %arg7[%c0_36, %c0_37, %c20], %19 {strides = array<i32>} : memref<16x16x36xf32, #tpu.memory_space<vmem>>, vector<16x16x4xf32>,
    %c2_38 = arith.constant 2 : index
    %c0_39 = arith.constant 0 : index
    %c0_40 = arith.constant 0 : index
    %21 = vector.load %arg6[%c2_38, %c0_39, %c0_40] : memref<18x18x4xf32, #tpu.memory_space<vmem>>, vector<16x16x4xf32>
    %c0_41 = arith.constant 0 : index
    %c0_42 = arith.constant 0 : index
    %c24 = arith.constant 24 : index
    %22 = vector.load %arg7[%c0_41, %c0_42, %c24] : memref<16x16x36xf32, #tpu.memory_space<vmem>>, vector<16x16x4xf32>
    tpu.vector_store %arg7[%c0_41, %c0_42, %c24], %21 {strides = array<i32>} : memref<16x16x36xf32, #tpu.memory_space<vmem>>, vector<16x16x4xf32>,
    %c2_43 = arith.constant 2 : index
    %c1_44 = arith.constant 1 : index
    %c0_45 = arith.constant 0 : index
    %23 = vector.load %arg6[%c2_43, %c1_44, %c0_45] : memref<18x18x4xf32, #tpu.memory_space<vmem>>, vector<16x16x4xf32>
    %c0_46 = arith.constant 0 : index
    %c0_47 = arith.constant 0 : index
    %c28 = arith.constant 28 : index
    %24 = vector.load %arg7[%c0_46, %c0_47, %c28] : memref<16x16x36xf32, #tpu.memory_space<vmem>>, vector<16x16x4xf32>
    tpu.vector_store %arg7[%c0_46, %c0_47, %c28], %23 {strides = array<i32>} : memref<16x16x36xf32, #tpu.memory_space<vmem>>, vector<16x16x4xf32>,
    %c2_48 = arith.constant 2 : index
    %c2_49 = arith.constant 2 : index
    %c0_50 = arith.constant 0 : index
    %25 = vector.load %arg6[%c2_48, %c2_49, %c0_50] : memref<18x18x4xf32, #tpu.memory_space<vmem>>, vector<16x16x4xf32>
    %c0_51 = arith.constant 0 : index
    %c0_52 = arith.constant 0 : index
    %c32 = arith.constant 32 : index
    %26 = vector.load %arg7[%c0_51, %c0_52, %c32] : memref<16x16x36xf32, #tpu.memory_space<vmem>>, vector<16x16x4xf32>
    tpu.vector_store %arg7[%c0_51, %c0_52, %c32], %25 {strides = array<i32>} : memref<16x16x36xf32, #tpu.memory_space<vmem>>, vector<16x16x4xf32>,
    %c0_53 = arith.constant 0 : index
    %c0_54 = arith.constant 0 : index
    %c0_55 = arith.constant 0 : index
    %27 = vector.load %arg7[%c0_53, %c0_54, %c0_55] : memref<16x16x36xf32, #tpu.memory_space<vmem>>, vector<16x16x36xf32>
    %28 = vector.shape_cast %27 : vector<16x16x36xf32> to vector<256x36xf32>
    %c0_56 = arith.constant 0 : index
    %c0_57 = arith.constant 0 : index
    %29 = vector.load %arg2[%c0_56, %c0_57] : memref<8x36xf32, #tpu.memory_space<vmem>>, vector<8x36xf32>
    %cst = arith.constant dense<0.000000e+00> : vector<8x256xf32>
    %30 = tpu.matmul %29, %28, %cst {dimension_numbers = #tpu.dot_dimension_numbers<[1], [1], [0], [0], [0, 0, 1, 0], [], []>} : vector<8x36xf32>, vector<256x36xf32>, vector<8x256xf32> -> vector<8x256xf32>
    %c0_58 = arith.constant 0 : index
    %c0_59 = arith.constant 0 : index
    %c0_60 = arith.constant 0 : index
    %31 = vector.load %arg3[%c0_58, %c0_59, %c0_60] : memref<1x8x256xf32, #tpu.memory_space<vmem>>, vector<1x8x256xf32>
    %32 = vector.shape_cast %31 : vector<1x8x256xf32> to vector<8x256xf32>
    %33 = vector.shape_cast %30 : vector<8x256xf32> to vector<1x8x256xf32>
    tpu.vector_store %arg3[%c0_58, %c0_59, %c0_60], %33 {strides = array<i32>} : memref<1x8x256xf32, #tpu.memory_space<vmem>>, vector<1x8x256xf32>,
    %c0_61 = arith.constant 0 : index
    %c0_62 = arith.constant 0 : index
    %34 = vector.load %arg4[%c0_61, %c0_62] : memref<8x1xf32, #tpu.memory_space<vmem>>, vector<8x1xf32>
    %cst_63 = arith.constant dense<0.000000e+00> : vector<8xf32>
    %35 = vector.multi_reduction <add>, %30, %cst_63 [1] : vector<8x256xf32> to vector<8xf32>
    %36 = vector.shape_cast %35 : vector<8xf32> to vector<8x1xf32>
    %37 = arith.addf %34, %36 : vector<8x1xf32>
    %c0_64 = arith.constant 0 : index
    %c0_65 = arith.constant 0 : index
    %38 = vector.load %arg4[%c0_64, %c0_65] : memref<8x1xf32, #tpu.memory_space<vmem>>, vector<8x1xf32>
    tpu.vector_store %arg4[%c0_64, %c0_65], %37 {strides = array<i32>} : memref<8x1xf32, #tpu.memory_space<vmem>>, vector<8x1xf32>,
    %c0_66 = arith.constant 0 : index
    %c0_67 = arith.constant 0 : index
    %39 = vector.load %arg5[%c0_66, %c0_67] : memref<8x1xf32, #tpu.memory_space<vmem>>, vector<8x1xf32>
    %40 = arith.mulf %30, %30 : vector<8x256xf32>
    %cst_68 = arith.constant dense<0.000000e+00> : vector<8xf32>
    %41 = vector.multi_reduction <add>, %40, %cst_68 [1] : vector<8x256xf32> to vector<8xf32>
    %42 = vector.shape_cast %41 : vector<8xf32> to vector<8x1xf32>
    %43 = arith.addf %39, %42 : vector<8x1xf32>
    %c0_69 = arith.constant 0 : index
    %c0_70 = arith.constant 0 : index
    %44 = vector.load %arg5[%c0_69, %c0_70] : memref<8x1xf32, #tpu.memory_space<vmem>>, vector<8x1xf32>
    tpu.vector_store %arg5[%c0_69, %c0_70], %43 {strides = array<i32>} : memref<8x1xf32, #tpu.memory_space<vmem>>, vector<8x1xf32>,
    return
  }
  func.func @transform_0(%arg0: i32) -> (i32, i32, i32, i32) {
    %c0_i32 = arith.constant 0 : i32
    %c0_i32_0 = arith.constant 0 : i32
    %c0_i32_1 = arith.constant 0 : i32
    %c0_i32_2 = arith.constant 0 : i32
    return %arg0, %c0_i32, %c0_i32_0, %c0_i32_1 : i32, i32, i32, i32
  }
  func.func @transform_1(%arg0: i32) -> (i32, i32) {
    %c0_i32 = arith.constant 0 : i32
    %c0_i32_0 = arith.constant 0 : i32
    %c0_i32_1 = arith.constant 0 : i32
    return %c0_i32, %c0_i32_0 : i32, i32
  }
  func.func @transform_2(%arg0: i32) -> (i32, i32, i32) {
    %c0_i32 = arith.constant 0 : i32
    %c0_i32_0 = arith.constant 0 : i32
    %c0_i32_1 = arith.constant 0 : i32
    return %arg0, %c0_i32, %c0_i32_0 : i32, i32, i32
  }
  func.func @transform_3(%arg0: i32) -> (i32, i32) {
    %c0_i32 = arith.constant 0 : i32
    %c0_i32_0 = arith.constant 0 : i32
    %c0_i32_1 = arith.constant 0 : i32
    return %c0_i32, %c0_i32_0 : i32, i32
  }
  func.func @transform_4(%arg0: i32) -> (i32, i32) {
    %c0_i32 = arith.constant 0 : i32
    %c0_i32_0 = arith.constant 0 : i32
    %c0_i32_1 = arith.constant 0 : i32
    return %c0_i32, %c0_i32_0 : i32, i32
  }
}

</mosaic_0001>

<bundles_post_ra>
// kernel: tpu_custom_call.1
= control target key start
LH: loop header
LB: loop body
LE: loop exit
PB: predicated region body
PF: predicated region fallthrough
CT: control target
= control target key end

     0   :  { %10 = vsyncpa [#allocation5], 0  ;;  %s3650_s0 = inlined_call_operand.vmem [shape: f32[2,16,16,4], index: 0, kind: input, shape index: {}]   ;;  %s3651_s1 = inlined_call_operand.vmem [shape: f32[8,36], index: 1, kind: input, shape index: {}]   ;;  %s3652_s2 = inlined_call_operand.hbm [shape: f32[2,8,256], index: 2, kind: output, shape index: {0}]   ;;  %s3653_s3 = inlined_call_operand.vmem [shape: f32[8,1], index: 3, kind: output, shape index: {1}]   ;;  %s3654_s4 = inlined_call_operand.vmem [shape: f32[8,1], index: 4, kind: output, shape index: {2}]  }
   0x1   :  { %12 = vsyncpa [#allocation5 + $0x1], 0  ;;  %s2513_s15 = smov 0   ;;  %s2515_s16 = smov 0  }
   0x2   :  { %s2517_s17 = smov 0   ;;  %s2519_s18 = smov 0  }
   0x3 LB: > { %s2534_s19 = sadd.s32 4294967295, %s2476_s18   ;;  %s2236_s20 = sadd.s32 4294967294, %s2476_s18   ;;  %s2476_s18 = sphi %s2519_s18, %s3662_s18   ;;  %s2472_s17 = sphi %s2517_s17, %s3661_s17   ;;  %s2468_s16 = sphi %s2515_s16, %s3660_s16   ;;  %s2464_s15 = sphi %s2513_s15, %s3659_s15  }
   0x4   : > { %s2538_s21 = sadd.s32 1, %s2476_s18   ;;  %s72_s22 = sadd.s32 1, %s2472_s17 }
   0x5   : > { %s69_s23 = ssub.s32 %s2476_s18, %s2538_s21  ;;  %p82_p0 = scmp.ne.s32.totalorder %s2472_s17, %s2468_s16 }
   0x6   : > { %p70_p1 = scmp.eq.s32.totalorder %s69_s23, 0  ;;  %p83_p2 = scmp.eq.s32.totalorder %s2534_s19, 1 }
   0x7   : > { %p88_p3 = scmp.ne.s32.totalorder %s2468_s16, %s2464_s15  ;;  %p89_p4 = scmp.eq.s32.totalorder %s2236_s20, 1 }
   0x8   : > { %s2549_s24 = scalar_select %p70_p1, %s2472_s17, %s72_s22  }
   0x9   : > { %p2551_p5 = por %p83_p2, %p82_p0  ;;  %p2555_p6 = por %p89_p4, %p88_p3 }
   0xa   : > { %p2239_p7 = scmp.ge.s32.totalorder %s2476_s18, 1  ;;  %p160_p8 = scmp.lt.s32.totalorder %s2476_s18, 3 }
   0xc   : > { %p161_p9 = pnand %p2239_p7, %p160_p8 }
   0xd   : > { %s179_s27 = sand.u32 (!%p161_p9), 1, %s2468_s16   ;;  %p186_p10 = scmp.lt.s32.totalorder (!%p161_p9), %s2534_s19, 1 }
   0xe   : > { %164 = sbr.rel (%p161_p9) target bundleno = 1065 (0x429), region = 28  ;;  %s2240_s28 = sshll.u32 (!%p161_p9), %s179_s27, 4 }
   0xf   : > { %s2571_s8 = scalar_lea.vmem (!%p161_p9), [#allocation4], %s2240_s28  ;;  %p2243_p11 = scmp.ne.s32.totalorder (!%p161_p9), %s2534_s19, 0 }
  0x15   : > { %s187_s29 = scalar_select %p186_p10, %s2534_s19, 1 }
  0x16   : > { %194 = sbr.rel (%p2243_p11) target bundleno = 51 (0x33), region = 32  ;;  %vm195_vm0 = vcmask (!%p2243_p11), 7168   ;;  %vm198_vm1 = vcmask (!%p2243_p11), 31744   ;;  %vm201_vm2 = vcmask (!%p2243_p11), 25600   ;;  %v2478_v0 = vmov (!%p2243_p11), 0.0  }
  0x17   : > { %s2282_s30 = sshll.u32 %s187_s29, 8  ;;  %196 = vst.msk [vmem:[%s3653_s3] sm:$0xff] (!%p2243_p11), %vm195_vm0, %v2478_v0  ;;  %197 = vst.msk [vmem:[%s3654_s4] sm:$0xff] (!%p2243_p11), %vm195_vm0, %v2478_v0 }
  0x18   : > { %s2569_s7 = scalar_lea.vmem %s3650_s0, %s2282_s30  ;;  %199 = vst.msk [vmem:[#allocation2] sm:$0xff] (!%p2243_p11), %vm198_vm1, %v2478_v0  ;;  %200 = vst.msk [vmem:[#allocation2 + $0x8] sm:$0xff] (!%p2243_p11), %vm198_vm1, %v2478_v0 }
  0x19   : > { %203 = vst.msk [vmem:[#allocation2 + $0x18] sm:$0xff] (!%p2243_p11), %vm198_vm1, %v2478_v0  ;;  %204 = vst.msk [vmem:[#allocation2 + $0x20] sm:$0xff] (!%p2243_p11), %vm198_vm1, %v2478_v0 }
  0x1a   : > { %206 = vst.msk [vmem:[#allocation2 + $0x30] sm:$0xff] (!%p2243_p11), %vm198_vm1, %v2478_v0  ;;  %207 = vst.msk [vmem:[#allocation2 + $0x38] sm:$0xff] (!%p2243_p11), %vm198_vm1, %v2478_v0 }
  0x1b   : > { %209 = vst.msk [vmem:[#allocation2 + $0x48] sm:$0xff] (!%p2243_p11), %vm198_vm1, %v2478_v0  ;;  %210 = vst.msk [vmem:[#allocation2 + $0x50] sm:$0xff] (!%p2243_p11), %vm198_vm1, %v2478_v0 }
  0x1c   : > { %212 = vst.msk [vmem:[#allocation2 + $0x60] sm:$0xff] (!%p2243_p11), %vm198_vm1, %v2478_v0  ;;  %213 = vst.msk [vmem:[#allocation2 + $0x68] sm:$0xff] (!%p2243_p11), %vm198_vm1, %v2478_v0 }
  0x1d   : > { %215 = vst.msk [vmem:[#allocation2 + $0x78] sm:$0xff] %vm198_vm1, %v2478_v0  ;;  %216 = vst.msk [vmem:[#allocation2 + $0x80] sm:$0xff] %vm198_vm1, %v2478_v0 }
  0x1e   : > { %218 = vst.msk [vmem:[#allocation2 + $0x90] sm:$0xff] %vm198_vm1, %v2478_v0  ;;  %219 = vst.msk [vmem:[#allocation2 + $0x98] sm:$0xff] %vm198_vm1, %v2478_v0 }
  0x1f   : > { %221 = vst.msk [vmem:[#allocation2 + $0xa8] sm:$0xff] %vm198_vm1, %v2478_v0  ;;  %222 = vst.msk [vmem:[#allocation2 + $0xb0] sm:$0xff] %vm198_vm1, %v2478_v0 }
  0x20   : > { %224 = vst.msk [vmem:[#allocation2 + $0xc0] sm:$0xff] %vm198_vm1, %v2478_v0  ;;  %225 = vst.msk [vmem:[#allocation2 + $0xc8] sm:$0xff] %vm198_vm1, %v2478_v0 }
  0x21   : > { %227 = vst.msk [vmem:[#allocation2 + $0xd8] sm:$0xff] %vm198_vm1, %v2478_v0  ;;  %228 = vst.msk [vmem:[#allocation2 + $0xe0] sm:$0xff] %vm198_vm1, %v2478_v0 }
  0x22   : > { %230 = vst.msk [vmem:[#allocation2 + $0xf0] sm:$0xff] %vm198_vm1, %v2478_v0  ;;  %231 = vst.msk [vmem:[#allocation2 + $0xf8] sm:$0xff] %vm198_vm1, %v2478_v0 }
  0x23   : > { %233 = vst.msk [vmem:[#allocation2 + $0x108] sm:$0xff] %vm198_vm1, %v2478_v0  ;;  %234 = vst.msk [vmem:[#allocation2 + $0x110] sm:$0xff] %vm198_vm1, %v2478_v0 }
  0x24   : > { %236 = vst.msk [vmem:[#allocation2 + $0x120] sm:$0xff] %vm198_vm1, %v2478_v0  ;;  %237 = vst.msk [vmem:[#allocation2 + $0x128] sm:$0xff] %vm198_vm1, %v2478_v0 }
  0x25   : > { %239 = vst.msk [vmem:[#allocation2 + $0x138] sm:$0xff] %vm198_vm1, %v2478_v0  ;;  %240 = vst.msk [vmem:[#allocation2 + $0x140] sm:$0xff] %vm198_vm1, %v2478_v0 }
  0x26   : > { %242 = vst.msk [vmem:[#allocation2 + $0x150] sm:$0xff] %vm198_vm1, %v2478_v0  ;;  %243 = vst.msk [vmem:[#allocation2 + $0x158] sm:$0xff] %vm198_vm1, %v2478_v0 }
  0x27   : > { %245 = vst.msk [vmem:[#allocation2 + $0x168] sm:$0xff] %vm198_vm1, %v2478_v0  ;;  %246 = vst.msk [vmem:[#allocation2 + $0x170] sm:$0xff] %vm198_vm1, %v2478_v0 }
  0x28   : > { %248 = vst.msk [vmem:[#allocation2 + $0x180] sm:$0xff] %vm198_vm1, %v2478_v0  ;;  %249 = vst.msk [vmem:[#allocation2 + $0x188] sm:$0xff] %vm198_vm1, %v2478_v0 }
  0x29   : > { %251 = vst.msk [vmem:[#allocation2 + $0x198] sm:$0xff] %vm198_vm1, %v2478_v0  ;;  %252 = vst.msk [vmem:[#allocation2 + $0x1a0] sm:$0xff] %vm198_vm1, %v2478_v0 }
  0x2a   : > { %202 = vst.msk [vmem:[#allocation2 + $0x10] sm:$0x3] %vm201_vm2, %v2478_v0  ;;  %205 = vst.msk [vmem:[#allocation2 + $0x28] sm:$0x3] %vm201_vm2, %v2478_v0 }
  0x2b   : > { %208 = vst.msk [vmem:[#allocation2 + $0x40] sm:$0x3] %vm201_vm2, %v2478_v0  ;;  %211 = vst.msk [vmem:[#allocation2 + $0x58] sm:$0x3] %vm201_vm2, %v2478_v0 }
  0x2c   : > { %214 = vst.msk [vmem:[#allocation2 + $0x70] sm:$0x3] %vm201_vm2, %v2478_v0  ;;  %217 = vst.msk [vmem:[#allocation2 + $0x88] sm:$0x3] %vm201_vm2, %v2478_v0 }
  0x2d   : > { %220 = vst.msk [vmem:[#allocation2 + $0xa0] sm:$0x3] %vm201_vm2, %v2478_v0  ;;  %223 = vst.msk [vmem:[#allocation2 + $0xb8] sm:$0x3] %vm201_vm2, %v2478_v0 }
  0x2e   : > { %226 = vst.msk [vmem:[#allocation2 + $0xd0] sm:$0x3] %vm201_vm2, %v2478_v0  ;;  %229 = vst.msk [vmem:[#allocation2 + $0xe8] sm:$0x3] %vm201_vm2, %v2478_v0 }
  0x2f   : > { %232 = vst.msk [vmem:[#allocation2 + $0x100] sm:$0x3] %vm201_vm2, %v2478_v0  ;;  %235 = vst.msk [vmem:[#allocation2 + $0x118] sm:$0x3] %vm201_vm2, %v2478_v0 }
  0x30   : > { %238 = vst.msk [vmem:[#allocation2 + $0x130] sm:$0x3] %vm201_vm2, %v2478_v0  ;;  %241 = vst.msk [vmem:[#allocation2 + $0x148] sm:$0x3] %vm201_vm2, %v2478_v0 }
  0x31   : > { %244 = vst.msk [vmem:[#allocation2 + $0x160] sm:$0x3] %vm201_vm2, %v2478_v0  ;;  %247 = vst.msk [vmem:[#allocation2 + $0x178] sm:$0x3] %vm201_vm2, %v2478_v0 }
  0x32   : > { %250 = vst.msk [vmem:[#allocation2 + $0x190] sm:$0x3] %vm201_vm2, %v2478_v0  ;;  %253 = vst.msk [vmem:[#allocation2 + $0x1a8] sm:$0x3] %vm201_vm2, %v2478_v0 }
  0x33 PF: > { %v254_v3 = vld [vmem:[%s2569_s7] sm:$0xff]  ;;  %vm287_vm3 = vcmask 31744   ;;  %s2479_s13 = smov 4   ;;  %v256_v4 = vld [vmem:[%s2569_s7 + $0x10] sm:$0xff]  ;;  %v255_v5 = vld [vmem:[%s2569_s7 + $0x8] sm:$0xff]  ;;  %s2480_s14 = smov 8  }
  0x34   : > { %288 = vst.msk [vmem:[#allocation2 + $0x19] sm:$0xff] %vm287_vm3, %v254_v3  ;;  %v258_v6 = vld [vmem:[%s2569_s7 + $0x20] sm:$0xff]  ;;  %290 = vst.msk [vmem:[#allocation2 + $0x31] sm:$0xff] %vm287_vm3, %v256_v4  ;;  %v257_v7 = vld [vmem:[%s2569_s7 + $0x18] sm:$0xff]  ;;  %s2481_s20 = smov 12   ;;  %vm544_vm4 = vcmask 64544  }
  0x35   : > { %v384_v1 = vld [vmem:[#allocation2 + $0x1] sm:$0xff]  ;;  %v385_v2 = vld [vmem:[#allocation2 + $0x9] sm:$0xff]  ;;  %289 = vst.msk [vmem:[#allocation2 + $0x21] sm:$0xff] %vm287_vm3, %v255_v5  ;;  %292 = vst.msk [vmem:[#allocation2 + $0x49] sm:$0xff] %vm287_vm3, %v258_v6  ;;  %s2482_s22 = smov 16   ;;  %s2483_s23 = smov 20  }
  0x36   : > { %448 = vrot.lane.b32.xlu0 %v384_v1, %s2479_s13  ;;  %v260_v8 = vld [vmem:[%s2569_s7 + $0x30] sm:$0xff]  ;;  %v259_v9 = vld [vmem:[%s2569_s7 + $0x28] sm:$0xff]  ;;  %291 = vst.msk [vmem:[#allocation2 + $0x39] sm:$0xff] %vm287_vm3, %v257_v7  ;;  %v262_v10 = vld [vmem:[%s2569_s7 + $0x40] sm:$0xff]  ;;  %s2484_s28 = smov 24   ;;  %s2485_s29 = smov 28  }
  0x37   : > { %294 = vst.msk [vmem:[#allocation2 + $0x61] sm:$0xff] %vm287_vm3, %v260_v8  ;;  %293 = vst.msk [vmem:[#allocation2 + $0x51] sm:$0xff] %vm287_vm3, %v259_v9  ;;  %v261_v11 = vld [vmem:[%s2569_s7 + $0x38] sm:$0xff]  ;;  %v264_v12 = vld [vmem:[%s2569_s7 + $0x50] sm:$0xff]  ;;  %s2486_s30 = smov 32   ;;  %vm737_vm5 = vcmask 97344  }
  0x38   : > { %296 = vst.msk [vmem:[#allocation2 + $0x79] sm:$0xff] %vm287_vm3, %v262_v10  ;;  %295 = vst.msk [vmem:[#allocation2 + $0x69] sm:$0xff] %vm287_vm3, %v261_v11  ;;  %v263_v13 = vld [vmem:[%s2569_s7 + $0x48] sm:$0xff]  ;;  %v266_v14 = vld [vmem:[%s2569_s7 + $0x60] sm:$0xff]  ;;  %vm930_vm6 = vcmask 130144   ;;  %vm1123_vm7 = vcmask 162944  }
  0x39   : > { %298 = vst.msk [vmem:[#allocation2 + $0x91] sm:$0xff] %vm287_vm3, %v264_v12  ;;  %v265_v15 = vld [vmem:[%s2569_s7 + $0x58] sm:$0xff]  ;;  %297 = vst.msk [vmem:[#allocation2 + $0x81] sm:$0xff] %vm287_vm3, %v263_v13  ;;  %v268_v16 = vld [vmem:[%s2569_s7 + $0x70] sm:$0xff]  ;;  %vm1316_vm8 = vcmask 195744   ;;  %vm1510_vm9 = vcmask 228544  }
  0x3a   : > { %450 = vrot.lane.b32.xlu0 %v385_v2, %s2479_s13  ;;  %300 = vst.msk [vmem:[#allocation2 + $0xa9] sm:$0xff] %vm287_vm3, %v266_v14  ;;  %299 = vst.msk [vmem:[#allocation2 + $0x99] sm:$0xff] %vm287_vm3, %v265_v15  ;;  %v267_v17 = vld [vmem:[%s2569_s7 + $0x68] sm:$0xff]  ;;  %v270_v18 = vld [vmem:[%s2569_s7 + $0x80] sm:$0xff]  ;;  %vm1703_vm10 = vcmask 261344   ;;  %vm1896_vm11 = vcmask 294144  }
  0x3b   : > { %302 = vst.msk [vmem:[#allocation2 + $0xc1] sm:$0xff] %vm287_vm3, %v268_v16  ;;  %301 = vst.msk [vmem:[#allocation2 + $0xb1] sm:$0xff] %vm287_vm3, %v267_v17  ;;  %v269_v19 = vld [vmem:[%s2569_s7 + $0x78] sm:$0xff]  ;;  %v272_v20 = vld [vmem:[%s2569_s7 + $0x90] sm:$0xff]  ;;  %vm1962_vm12 = vcmask 293888   ;;  %s2165_s9 = sshll.u32 %s2571_s8, 4  ;;  %s2166_s9 = int_to_ptr.vmem [resolvable:$true] %s2165_s9 }
  0x3c   : > { %304 = vst.msk [vmem:[#allocation2 + $0xd9] sm:$0xff] %vm287_vm3, %v270_v18  ;;  %v271_v21 = vld [vmem:[%s2569_s7 + $0x88] sm:$0xff]  ;;  %303 = vst.msk [vmem:[#allocation2 + $0xc9] sm:$0xff] %vm287_vm3, %v269_v19  ;;  %v274_v22 = vld [vmem:[%s2569_s7 + $0xa0] sm:$0xff] }
  0x3d   : > { %306 = vst.msk [vmem:[#allocation2 + $0xf1] sm:$0xff] %vm287_vm3, %v272_v20  ;;  %305 = vst.msk [vmem:[#allocation2 + $0xe1] sm:$0xff] %vm287_vm3, %v271_v21  ;;  %v273_v23 = vld [vmem:[%s2569_s7 + $0x98] sm:$0xff]  ;;  %v276_v24 = vld [vmem:[%s2569_s7 + $0xb0] sm:$0xff] }
  0x3e   : > { %v2677_v25 = vld [vmem:[#allocation2 + $0x19] sm:$0xff]  ;;  %308 = vst.msk [vmem:[#allocation2 + $0x109] sm:$0xff] %vm287_vm3, %v274_v22  ;;  %307 = vst.msk [vmem:[#allocation2 + $0xf9] sm:$0xff] %vm287_vm3, %v273_v23  ;;  %v275_v26 = vld [vmem:[%s2569_s7 + $0xa8] sm:$0xff] }
  0x3f   : > { %310 = vst.msk [vmem:[#allocation2 + $0x121] sm:$0xff] %vm287_vm3, %v276_v24  ;;  %v278_v27 = vld [vmem:[%s2569_s7 + $0xc0] sm:$0xff]  ;;  %452 = vrot.lane.b32.xlu1 %v2677_v25, %s2479_s13  ;;  %v2686_v28 = vld [vmem:[#allocation2 + $0x31] sm:$0xff]  ;;  %309 = vst.msk [vmem:[#allocation2 + $0x111] sm:$0xff] %vm287_vm3, %v275_v26 }
  0x40   : > { %312 = vst.msk [vmem:[#allocation2 + $0x139] sm:$0xff] %vm287_vm3, %v278_v27  ;;  %456 = vrot.lane.b32.xlu0 %v2686_v28, %s2479_s13  ;;  %v2692_v29 = vld [vmem:[#allocation2 + $0x21] sm:$0xff]  ;;  %v2694_v30 = vld [vmem:[#allocation2 + $0x49] sm:$0xff]  ;;  %v2700_v31 = vld [vmem:[#allocation2 + $0x39] sm:$0xff] }
  0x41   : > { %v2702_v32 = vld [vmem:[#allocation2 + $0x61] sm:$0xff]  ;;  %v277_v33 = vld [vmem:[%s2569_s7 + $0xb8] sm:$0xff]  ;;  %v280_v34 = vld [vmem:[%s2569_s7 + $0xd0] sm:$0xff] }
  0x42   : > { %311 = vst.msk [vmem:[#allocation2 + $0x129] sm:$0xff] %vm287_vm3, %v277_v33  ;;  %v279_v35 = vld [vmem:[%s2569_s7 + $0xc8] sm:$0xff]  ;;  %v282_v36 = vld [vmem:[%s2569_s7 + $0xe0] sm:$0xff]  ;;  %v2713_v37 = vld [vmem:[#allocation2 + $0x51] sm:$0xff] }
  0x43   : > { %454 = vrot.lane.b32.xlu1 %v2692_v29, %s2479_s13  ;;  %314 = vst.msk [vmem:[#allocation2 + $0x151] sm:$0xff] %vm287_vm3, %v280_v34  ;;  %313 = vst.msk [vmem:[#allocation2 + $0x141] sm:$0xff] %vm287_vm3, %v279_v35  ;;  %v281_v38 = vld [vmem:[%s2569_s7 + $0xd8] sm:$0xff]  ;;  %v283_v39 = vld [vmem:[%s2569_s7 + $0xe8] sm:$0xff] }
  0x44   : > { %460 = vrot.lane.b32.xlu0 %v2694_v30, %s2479_s13  ;;  %316 = vst.msk [vmem:[#allocation2 + $0x169] sm:$0xff] %vm287_vm3, %v282_v36  ;;  %v394_v40 = vld [vmem:[#allocation2 + $0x79] sm:$0xff]  ;;  %315 = vst.msk [vmem:[#allocation2 + $0x159] sm:$0xff] %vm287_vm3, %v281_v38  ;;  %v2725_v41 = vld [vmem:[#allocation2 + $0x69] sm:$0xff] }
  0x45   : > { %317 = vst.msk [vmem:[#allocation2 + $0x171] sm:$0xff] %vm287_vm3, %v283_v39  ;;  %v396_v42 = vld [vmem:[#allocation2 + $0x91] sm:$0xff]  ;;  %v395_v43 = vld [vmem:[#allocation2 + $0x81] sm:$0xff]  ;;  %v398_v44 = vld [vmem:[#allocation2 + $0xa9] sm:$0xff] }
  0x46   : > { %v2730_v45 = vld [vmem:[#allocation2 + $0xe0] sm:$0xff]  ;;  %v2732_v46 = vld [vmem:[#allocation2 + $0xd8] sm:$0xff]  ;;  %v321_v51 = vld [vmem:[#allocation2 + $0x8] sm:$0xff] }
  0x47   : > { %458 = vrot.lane.b32.xlu1 %v2700_v31, %s2479_s13  ;;  %v2734_v47 = vld [vmem:[#allocation2 + $0x20] sm:$0xff]  ;;  %v2736_v49 = vld [vmem:[#allocation2 + $0x18] sm:$0xff]  ;;  %370 = vst.msk [vmem:[#allocation3 + $0x90] sm:$0xff] %vm287_vm3, %v2732_v46  ;;  %371 = vst.msk [vmem:[#allocation3 + $0x98] sm:$0xff] %vm287_vm3, %v2730_v45 }
  0x48   : > { %464 = vrot.lane.b32.xlu0 %v2702_v32, %s2479_s13  ;;  %v397_v48 = vld [vmem:[#allocation2 + $0x99] sm:$0xff]  ;;  %355 = vst.msk [vmem:[#allocation3 + $0x18] sm:$0xff] %vm287_vm3, %v2734_v47  ;;  %v400_v52 = vld [vmem:[#allocation2 + $0xc1] sm:$0xff]  ;;  %353 = vst.msk [vmem:[#allocation3 + $0x8] sm:$0xff] %vm287_vm3, %v321_v51 }
  0x49   : > { %v320_v50 = vld [vmem:[#allocation2] sm:$0xff]  ;;  %354 = vst.msk [vmem:[#allocation3 + $0x10] sm:$0xff] %vm287_vm3, %v2736_v49  ;;  %v2749_v53 = vld [vmem:[#allocation2 + $0x30] sm:$0xff]  ;;  %v2751_v54 = vld [vmem:[#allocation2 + $0x48] sm:$0xff] }
  0x4a   : > { %352 = vst.msk [vmem:[#allocation3] sm:$0xff] %vm287_vm3, %v320_v50  ;;  %356 = vst.msk [vmem:[#allocation3 + $0x20] sm:$0xff] %vm287_vm3, %v2749_v53  ;;  %v2758_v55 = vld [vmem:[#allocation2 + $0x38] sm:$0xff]  ;;  %v2762_v57 = vld [vmem:[#allocation2 + $0xf0] sm:$0xff] }
  0x4b   : > { %462 = vrot.lane.b32.xlu1 %v2713_v37, %s2479_s13  ;;  %358 = vst.msk [vmem:[#allocation3 + $0x30] sm:$0xff] %vm287_vm3, %v2751_v54  ;;  %v2760_v56 = vld [vmem:[#allocation2 + $0xf8] sm:$0xff]  ;;  %357 = vst.msk [vmem:[#allocation3 + $0x28] sm:$0xff] %vm287_vm3, %v2758_v55  ;;  %v2766_v58 = vld [vmem:[#allocation2 + $0x60] sm:$0xff] }
  0x4c   : > { %468 = vrot.lane.b32.xlu0 %v394_v40, %s2479_s13  ;;  %v2768_v59 = vld [vmem:[#allocation2 + $0x50] sm:$0xff]  ;;  %v2770_v60 = vld [vmem:[#allocation2 + $0x78] sm:$0xff]  ;;  %372 = vst.msk [vmem:[#allocation3 + $0xa0] sm:$0xff] %vm287_vm3, %v2762_v57  ;;  %373 = vst.msk [vmem:[#allocation3 + $0xa8] sm:$0xff] %vm287_vm3, %v2760_v56 }
  0x4d   : > { %360 = vst.msk [vmem:[#allocation3 + $0x40] sm:$0xff] %vm287_vm3, %v2766_v58  ;;  %359 = vst.msk [vmem:[#allocation3 + $0x38] sm:$0xff] %vm287_vm3, %v2768_v59  ;;  %v2782_v61 = vld [vmem:[#allocation2 + $0x68] sm:$0xff]  ;;  %v2784_v62 = vld [vmem:[#allocation2 + $0x90] sm:$0xff] }
  0x4e   : > { %362 = vst.msk [vmem:[#allocation3 + $0x50] sm:$0xff] %vm287_vm3, %v2770_v60  ;;  %v2786_v63 = vld [vmem:[#allocation2 + $0x80] sm:$0xff]  ;;  %361 = vst.msk [vmem:[#allocation3 + $0x48] sm:$0xff] %vm287_vm3, %v2782_v61  ;;  %v334_v0 = vld [vmem:[#allocation2 + $0xa8] sm:$0xff] }
  0x4f   : > { %466 = vrot.lane.b32.xlu1 %v2725_v41, %s2479_s13  ;;  %364 = vst.msk [vmem:[#allocation3 + $0x60] sm:$0xff] %vm287_vm3, %v2784_v62  ;;  %363 = vst.msk [vmem:[#allocation3 + $0x58] sm:$0xff] %vm287_vm3, %v2786_v63  ;;  %v2795_v1 = vld [vmem:[#allocation2 + $0x98] sm:$0xff]  ;;  %v336_v3 = vld [vmem:[#allocation2 + $0xc0] sm:$0xff] }
  0x50   : > { %472 = vrot.lane.b32.xlu0 %v396_v42, %s2479_s13  ;;  %v399_v2 = vld [vmem:[#allocation2 + $0xb1] sm:$0xff]  ;;  %366 = vst.msk [vmem:[#allocation3 + $0x70] sm:$0xff] %vm287_vm3, %v334_v0  ;;  %365 = vst.msk [vmem:[#allocation3 + $0x68] sm:$0xff] %vm287_vm3, %v2795_v1  ;;  %v2801_v5 = vld [vmem:[#allocation2 + $0xd9] sm:$0xff] }
  0x51   : > { %v335_v4 = vld [vmem:[#allocation2 + $0xb0] sm:$0xff]  ;;  %368 = vst.msk [vmem:[#allocation3 + $0x80] sm:$0xff] %vm287_vm3, %v336_v3  ;;  %v337_v6 = vld [vmem:[#allocation2 + $0xc8] sm:$0xff]  ;;  %v2811_v8 = vld [vmem:[#allocation2 + $0x120] sm:$0xff] }
  0x52   : > { %367 = vst.msk [vmem:[#allocation3 + $0x78] sm:$0xff] %vm287_vm3, %v335_v4  ;;  %v2805_v7 = vld [vmem:[#allocation2 + $0x108] sm:$0xff]  ;;  %369 = vst.msk [vmem:[#allocation3 + $0x88] sm:$0xff] %vm287_vm3, %v337_v6  ;;  %v2813_v9 = vld [vmem:[#allocation2 + $0x110] sm:$0xff] }
  0x53   : > { %470 = vrot.lane.b32.xlu1 %v395_v43, %s2479_s13  ;;  %374 = vst.msk [vmem:[#allocation3 + $0xb0] sm:$0xff] %vm287_vm3, %v2805_v7  ;;  %v401_v10 = vld [vmem:[#allocation2 + $0xc9] sm:$0xff]  ;;  %376 = vst.msk [vmem:[#allocation3 + $0xc0] sm:$0xff] %vm287_vm3, %v2811_v8  ;;  %v2821_v11 = vld [vmem:[#allocation2 + $0xf1] sm:$0xff] }
  0x54   : > { %476 = vrot.lane.b32.xlu0 %v398_v44, %s2479_s13  ;;  %375 = vst.msk [vmem:[#allocation3 + $0xb8] sm:$0xff] %vm287_vm3, %v2813_v9  ;;  %v2824_v12 = vld [vmem:[#allocation2 + $0x138] sm:$0xff]  ;;  %v2826_v13 = vld [vmem:[#allocation2 + $0x128] sm:$0xff]  ;;  %v2840_v16 = vld [vmem:[#allocation2 + $0x150] sm:$0xff] }
  0x55   : > { %v2830_v14 = vld [vmem:[#allocation2 + $0xe1] sm:$0xff]  ;;  %378 = vst.msk [vmem:[#allocation3 + $0xd0] sm:$0xff] %vm287_vm3, %v2824_v12  ;;  %377 = vst.msk [vmem:[#allocation3 + $0xc8] sm:$0xff] %vm287_vm3, %v2826_v13  ;;  %v2836_v15 = vld [vmem:[#allocation2 + $0x109] sm:$0xff] }
  0x56   : > { %v2842_v17 = vld [vmem:[#allocation2 + $0x140] sm:$0xff]  ;;  %380 = vst.msk [vmem:[#allocation3 + $0xe0] sm:$0xff] %vm287_vm3, %v2840_v16  ;;  %v2856_v20 = vld [vmem:[#allocation2 + $0x168] sm:$0xff]  ;;  %v2858_v21 = vld [vmem:[#allocation2 + $0x158] sm:$0xff] }
  0x57   : > { %474 = vrot.lane.b32.xlu1 %v397_v48, %s2479_s13  ;;  %v2846_v18 = vld [vmem:[#allocation2 + $0xf9] sm:$0xff]  ;;  %379 = vst.msk [vmem:[#allocation3 + $0xd8] sm:$0xff] %vm287_vm3, %v2842_v17  ;;  %v2852_v19 = vld [vmem:[#allocation2 + $0x121] sm:$0xff]  ;;  %v2862_v22 = vld [vmem:[#allocation2 + $0x111] sm:$0xff] }
  0x58   : > { %480 = vrot.lane.b32.xlu0 %v400_v52, %s2479_s13  ;;  %382 = vst.msk [vmem:[#allocation3 + $0xf0] sm:$0xff] %vm287_vm3, %v2856_v20  ;;  %381 = vst.msk [vmem:[#allocation3 + $0xe8] sm:$0xff] %vm287_vm3, %v2858_v21  ;;  %v410_v23 = vld [vmem:[#allocation2 + $0x139] sm:$0xff]  ;;  %v2870_v24 = vld [vmem:[#allocation2 + $0x170] sm:$0xff] }
  0x59   : > { %v2873_v26 = vld [vmem:[#allocation2 + $0x129] sm:$0xff]  ;;  %383 = vst.msk [vmem:[#allocation3 + $0xf8] sm:$0xff] %vm287_vm3, %v2870_v24  ;;  %v412_v27 = vld [vmem:[#allocation2 + $0x151] sm:$0xff]  ;;  %v2880_v33 = vld [vmem:[#allocation2 + $0x141] sm:$0xff] }
  0x5a   : > { %v414_v34 = vld [vmem:[#allocation2 + $0x169] sm:$0xff]  ;;  %v413_v35 = vld [vmem:[#allocation2 + $0x159] sm:$0xff]  ;;  %v415_v38 = vld [vmem:[#allocation2 + $0x171] sm:$0xff] }
  0x5b   : > { %478 = vrot.lane.b32.xlu1 %v399_v2, %s2479_s13  ;;  %v577_v36 = vld [vmem:[#allocation2 + $0x2] sm:$0xff]  ;;  %v2887_v39 = vld [vmem:[#allocation2 + $0x1a] sm:$0xff]  ;;  %v578_v40 = vld [vmem:[#allocation2 + $0xa] sm:$0xff] }
  0x5c   : > { %484 = vrot.lane.b32.xlu0 %v2801_v5, %s2479_s13  ;;  %v2892_v42 = vld [vmem:[#allocation2 + $0x32] sm:$0xff]  ;;  %v580_v43 = vld [vmem:[#allocation2 + $0x22] sm:$0xff]  ;;  %v2897_v44 = vld [vmem:[#allocation2 + $0x4a] sm:$0xff] }
  0x5d   : > { %v2902_v48 = vld [vmem:[#allocation2 + $0x3a] sm:$0xff]  ;;  %v2904_v50 = vld [vmem:[#allocation2 + $0x62] sm:$0xff]  ;;  %v2910_v51 = vld [vmem:[#allocation2 + $0x52] sm:$0xff] }
  0x5e   : > { %v2912_v52 = vld [vmem:[#allocation2 + $0x7a] sm:$0xff]  ;;  %v2918_v0 = vld [vmem:[#allocation2 + $0x6a] sm:$0xff]  ;;  %v589_v2 = vld [vmem:[#allocation2 + $0x92] sm:$0xff] }
  0x5f   : > { %482 = vrot.lane.b32.xlu1 %v401_v10, %s2479_s13  ;;  %v2923_v3 = vld [vmem:[#allocation2 + $0x82] sm:$0xff]  ;;  %v591_v4 = vld [vmem:[#allocation2 + $0xaa] sm:$0xff]  ;;  %v590_v6 = vld [vmem:[#allocation2 + $0x9a] sm:$0xff] }
  0x60   : > { %488 = vrot.lane.b32.xlu0 %v2821_v11, %s2479_s13  ;;  %v593_v10 = vld [vmem:[#allocation2 + $0xc2] sm:$0xff]  ;;  %vm3184_vm13 = vmpackc.low %vm1962_vm12, %vm1962_vm12 }
  0x63   : > { %486 = vrot.lane.b32.xlu1 %v2830_v14, %s2479_s13 }
  0x64   : > { %492 = vrot.lane.b32.xlu0 %v2836_v15, %s2479_s13 }
  0x67   : > { %490 = vrot.lane.b32.xlu1 %v2846_v18, %s2479_s13 }
  0x68   : > { %496 = vrot.lane.b32.xlu0 %v2852_v19, %s2479_s13 }
  0x6b   : > { %494 = vrot.lane.b32.xlu1 %v2862_v22, %s2479_s13 }
  0x6c   : > { %500 = vrot.lane.b32.xlu0 %v410_v23, %s2479_s13  ;;  %v592_v23 = vld [vmem:[#allocation2 + $0xb2] sm:$0xff] }
  0x6f   : > { %498 = vrot.lane.b32.xlu1 %v2873_v26, %s2479_s13 }
  0x70   : > { %504 = vrot.lane.b32.xlu0 %v412_v27, %s2479_s13  ;;  %v595_v27 = vld [vmem:[#allocation2 + $0xda] sm:$0xff] }
  0x73   : > { %502 = vrot.lane.b32.xlu1 %v2880_v33, %s2479_s13 }
  0x74   : > { %508 = vrot.lane.b32.xlu0 %v414_v34, %s2479_s13  ;;  %v594_v34 = vld [vmem:[#allocation2 + $0xca] sm:$0xff] }
  0x77   : > { %506 = vrot.lane.b32.xlu1 %v413_v35, %s2479_s13 }
  0x78   : > { %641 = vrot.lane.b32.xlu0 %v577_v36, %s2480_s14 }
  0x7b   : > { %510 = vrot.lane.b32.xlu1 %v415_v38, %s2479_s13  ;;  %s2151_s13 = scalar_lea.sflag [#allocation5], %s179_s27 }
  0x7c   : > { %645 = vrot.lane.b32.xlu0 %v2887_v39, %s2480_s14 }
  0x7f   : > { %643 = vrot.lane.b32.xlu1 %v578_v40, %s2480_s14 }
  0x80   : > { %649 = vrot.lane.b32.xlu0 %v2892_v42, %s2480_s14 }
  0x83   : > { %647 = vrot.lane.b32.xlu1 %v580_v43, %s2480_s14 }
  0x84   : > { %653 = vrot.lane.b32.xlu0 %v2897_v44, %s2480_s14 }
  0x87   : > { %651 = vrot.lane.b32.xlu1 %v2902_v48, %s2480_s14 }
  0x88   : > { %657 = vrot.lane.b32.xlu0 %v2904_v50, %s2480_s14 }
  0x8b   : > { %655 = vrot.lane.b32.xlu1 %v2910_v51, %s2480_s14 }
  0x8c   : > { %661 = vrot.lane.b32.xlu0 %v2912_v52, %s2480_s14 }
  0x8f   : > { %659 = vrot.lane.b32.xlu1 %v2918_v0, %s2480_s14 }
  0x90   : > { %665 = vrot.lane.b32.xlu0 %v589_v2, %s2480_s14  ;;  %v2980_v2 = vld [vmem:[#allocation2 + $0xfa] sm:$0xff] }
  0x93   : > { %663 = vrot.lane.b32.xlu1 %v2923_v3, %s2480_s14 }
  0x94   : > { %669 = vrot.lane.b32.xlu0 %v591_v4, %s2480_s14 }
  0x97   : > { %667 = vrot.lane.b32.xlu1 %v590_v6, %s2480_s14  ;;  %v2988_v6 = vld [vmem:[#allocation2 + $0xf2] sm:$0xff] }
  0x98   : > { %673 = vrot.lane.b32.xlu0 %v593_v10, %s2480_s14 }
  0x9b   : > { %671 = vrot.lane.b32.xlu1 %v592_v23, %s2480_s14 }
  0x9c   : > { %677 = vrot.lane.b32.xlu0 %v595_v27, %s2480_s14 }
  0x9f   : > { %675 = vrot.lane.b32.xlu1 %v594_v34, %s2480_s14 }
  0xa0   : > { %868 = vrot.lane.b32.xlu0 %v2730_v45, %s2481_s20 }
  0xa3   : > { %866 = vrot.lane.b32.xlu1 %v2732_v46, %s2481_s20  ;;  %v1173_v46 = vld [vmem:[#allocation2 + $0xe2] sm:$0xff] }
  0xa4   : > { %836 = vrot.lane.b32.xlu0 %v2734_v47, %s2481_s20 }
  0xa7   : > { %834 = vrot.lane.b32.xlu1 %v2736_v49, %s2481_s20 }
  0xa8   : > { %1061 = vrot.lane.b32.xlu0 %v2830_v14, %s2482_s22  ;;  %v449_v35 = vpop.permute.xlu0 %448 }
  0xa9   : > { %545 = vst.msk [vmem:[#allocation3] sm:$0xff] %vm544_vm4, %v449_v35 }
  0xab   : > { %1059 = vrot.lane.b32.xlu1 %v2801_v5, %s2482_s22 }
  0xac   : > { %1029 = vrot.lane.b32.xlu0 %v2692_v29, %s2482_s22  ;;  %v451_v45 = vpop.permute.xlu0 %450 }
  0xad   : > { %546 = vst.msk [vmem:[#allocation3 + $0x8] sm:$0xff] %vm544_vm4, %v451_v45 }
  0xaf   : > { %1027 = vrot.lane.b32.xlu1 %v2677_v25, %s2482_s22 }
  0xb0   : > { %1254 = vrot.lane.b32.xlu0 %v1173_v46, %s2483_s23 }
  0xb1   : > { %v453_v47 = vpop.permute.xlu1 %452 }
  0xb2   : > { %547 = vst.msk [vmem:[#allocation3 + $0x10] sm:$0xff] %vm544_vm4, %v453_v47  ;;  %v457_v49 = vpop.permute.xlu0 %456 }
  0xb3   : > { %1252 = vrot.lane.b32.xlu1 %v595_v27, %s2483_s23  ;;  %549 = vst.msk [vmem:[#allocation3 + $0x20] sm:$0xff] %vm544_vm4, %v457_v49 }
  0xb4   : > { %1222 = vrot.lane.b32.xlu0 %v580_v43, %s2483_s23 }
  0xb5   : > { %v455_v29 = vpop.permute.xlu1 %454 }
  0xb6   : > { %548 = vst.msk [vmem:[#allocation3 + $0x18] sm:$0xff] %vm544_vm4, %v455_v29  ;;  %v461_v5 = vpop.permute.xlu0 %460 }
  0xb7   : > { %1220 = vrot.lane.b32.xlu1 %v2887_v39, %s2483_s23  ;;  %551 = vst.msk [vmem:[#allocation3 + $0x30] sm:$0xff] %vm544_vm4, %v461_v5 }
  0xb8   : > { %1448 = vrot.lane.b32.xlu0 %v2760_v56, %s2484_s28 }
  0xb9   : > { %v459_v25 = vpop.permute.xlu1 %458 }
  0xba   : > { %550 = vst.msk [vmem:[#allocation3 + $0x28] sm:$0xff] %vm544_vm4, %v459_v25  ;;  %v465_v14 = vpop.permute.xlu0 %464 }
  0xbb   : > { %1446 = vrot.lane.b32.xlu1 %v2762_v57, %s2484_s28  ;;  %553 = vst.msk [vmem:[#allocation3 + $0x40] sm:$0xff] %vm544_vm4, %v465_v14 }
  0xbc   : > { %1416 = vrot.lane.b32.xlu0 %v2758_v55, %s2484_s28 }
  0xbd   : > { %v463_v36 = vpop.permute.xlu1 %462 }
  0xbe   : > { %552 = vst.msk [vmem:[#allocation3 + $0x38] sm:$0xff] %vm544_vm4, %v463_v36  ;;  %v469_v38 = vpop.permute.xlu0 %468  ;;  %v3055_v36 = vld [vmem:[#allocation2 + $0x10a] sm:$0xff] }
  0xbf   : > { %1414 = vrot.lane.b32.xlu1 %v2749_v53, %s2484_s28  ;;  %555 = vst.msk [vmem:[#allocation3 + $0x50] sm:$0xff] %vm544_vm4, %v469_v38 }
  0xc0   : > { %1641 = vrot.lane.b32.xlu0 %v2846_v18, %s2485_s29 }
  0xc1   : > { %v467_v39 = vpop.permute.xlu1 %466 }
  0xc2   : > { %554 = vst.msk [vmem:[#allocation3 + $0x48] sm:$0xff] %vm544_vm4, %v467_v39  ;;  %v473_v40 = vpop.permute.xlu0 %472 }
  0xc3   : > { %1639 = vrot.lane.b32.xlu1 %v2821_v11, %s2485_s29  ;;  %557 = vst.msk [vmem:[#allocation3 + $0x60] sm:$0xff] %vm544_vm4, %v473_v40 }
  0xc4   : > { %1609 = vrot.lane.b32.xlu0 %v2700_v31, %s2485_s29 }
  0xc5   : > { %v471_v43 = vpop.permute.xlu1 %470 }
  0xc6   : > { %556 = vst.msk [vmem:[#allocation3 + $0x58] sm:$0xff] %vm544_vm4, %v471_v43  ;;  %v477_v4 = vpop.permute.xlu0 %476  ;;  %v3067_v43 = vld [vmem:[#allocation2 + $0x112] sm:$0xff] }
  0xc7   : > { %1607 = vrot.lane.b32.xlu1 %v2686_v28, %s2485_s29  ;;  %559 = vst.msk [vmem:[#allocation3 + $0x70] sm:$0xff] %vm544_vm4, %v477_v4 }
  0xc8   : > { %1834 = vrot.lane.b32.xlu0 %v2980_v2, %s2486_s30 }
  0xc9   : > { %v475_v10 = vpop.permute.xlu1 %474 }
  0xca   : > { %558 = vst.msk [vmem:[#allocation3 + $0x68] sm:$0xff] %vm544_vm4, %v475_v10  ;;  %v481_v23 = vpop.permute.xlu0 %480 }
  0xcb   : > { %1832 = vrot.lane.b32.xlu1 %v2988_v6, %s2486_s30  ;;  %561 = vst.msk [vmem:[#allocation3 + $0x80] sm:$0xff] %vm544_vm4, %v481_v23 }
  0xcc   : > { %1802 = vrot.lane.b32.xlu0 %v2902_v48, %s2486_s30 }
  0xcd   : > { %v479_v27 = vpop.permute.xlu1 %478 }
  0xce   : > { %560 = vst.msk [vmem:[#allocation3 + $0x78] sm:$0xff] %vm544_vm4, %v479_v27  ;;  %v485_v34 = vpop.permute.xlu0 %484 }
  0xcf   : > { %1800 = vrot.lane.b32.xlu1 %v2892_v42, %s2486_s30  ;;  %563 = vst.msk [vmem:[#allocation3 + $0x90] sm:$0xff] %vm544_vm4, %v485_v34 }
  0xd0   : > { %870 = vrot.lane.b32.xlu0 %v2762_v57, %s2481_s20 }
  0xd1   : > { %v483_v35 = vpop.permute.xlu1 %482 }
  0xd2   : > { %562 = vst.msk [vmem:[#allocation3 + $0x88] sm:$0xff] %vm544_vm4, %v483_v35  ;;  %v489_v45 = vpop.permute.xlu0 %488 }
  0xd3   : > { %679 = vrot.lane.b32.xlu1 %v1173_v46, %s2480_s14  ;;  %565 = vst.msk [vmem:[#allocation3 + $0xa0] sm:$0xff] %vm544_vm4, %v489_v45 }
  0xd4   : > { %838 = vrot.lane.b32.xlu0 %v2749_v53, %s2481_s20 }
  0xd5   : > { %v487_v47 = vpop.permute.xlu1 %486 }
  0xd6   : > { %564 = vst.msk [vmem:[#allocation3 + $0x98] sm:$0xff] %vm544_vm4, %v487_v47  ;;  %v493_v49 = vpop.permute.xlu0 %492 }
  0xd7   : > { %872 = vrot.lane.b32.xlu1 %v2760_v56, %s2481_s20  ;;  %567 = vst.msk [vmem:[#allocation3 + $0xb0] sm:$0xff] %vm544_vm4, %v493_v49 }
  0xd8   : > { %1063 = vrot.lane.b32.xlu0 %v2821_v11, %s2482_s22 }
  0xd9   : > { %v491_v57 = vpop.permute.xlu1 %490 }
  0xda   : > { %566 = vst.msk [vmem:[#allocation3 + $0xa8] sm:$0xff] %vm544_vm4, %v491_v57  ;;  %v497_v46 = vpop.permute.xlu0 %496 }
  0xdb   : > { %840 = vrot.lane.b32.xlu1 %v2758_v55, %s2481_s20  ;;  %569 = vst.msk [vmem:[#allocation3 + $0xc0] sm:$0xff] %vm544_vm4, %v497_v46 }
  0xdc   : > { %1031 = vrot.lane.b32.xlu0 %v2686_v28, %s2482_s22 }
  0xdd   : > { %v495_v53 = vpop.permute.xlu1 %494 }
  0xde   : > { %568 = vst.msk [vmem:[#allocation3 + $0xb8] sm:$0xff] %vm544_vm4, %v495_v53  ;;  %v501_v56 = vpop.permute.xlu0 %500  ;;  %v3137_v53 = vld [vmem:[#allocation2 + $0x122] sm:$0xff] }
  0xdf   : > { %1065 = vrot.lane.b32.xlu1 %v2846_v18, %s2482_s22  ;;  %571 = vst.msk [vmem:[#allocation3 + $0xd0] sm:$0xff] %vm544_vm4, %v501_v56 }
  0xe0   : > { %1256 = vrot.lane.b32.xlu0 %v2988_v6, %s2483_s23 }
  0xe1   : > { %v499_v11 = vpop.permute.xlu1 %498 }
  0xe2   : > { %570 = vst.msk [vmem:[#allocation3 + $0xc8] sm:$0xff] %vm544_vm4, %v499_v11  ;;  %v505_v55 = vpop.permute.xlu0 %504 }
  0xe3   : > { %1033 = vrot.lane.b32.xlu1 %v2700_v31, %s2482_s22  ;;  %573 = vst.msk [vmem:[#allocation3 + $0xe0] sm:$0xff] %vm544_vm4, %v505_v55 }
  0xe4   : > { %1224 = vrot.lane.b32.xlu0 %v2892_v42, %s2483_s23 }
  0xe5   : > { %v503_v28 = vpop.permute.xlu1 %502 }
  0xe6   : > { %572 = vst.msk [vmem:[#allocation3 + $0xd8] sm:$0xff] %vm544_vm4, %v503_v28  ;;  %v509_v18 = vpop.permute.xlu0 %508 }
  0xe7   : > { %1258 = vrot.lane.b32.xlu1 %v2980_v2, %s2483_s23  ;;  %575 = vst.msk [vmem:[#allocation3 + $0xf0] sm:$0xff] %vm544_vm4, %v509_v18 }
  0xe8   : > { %1450 = vrot.lane.b32.xlu0 %v2805_v7, %s2484_s28 }
  0xe9   : > { %v507_v29 = vpop.permute.xlu1 %506 }
  0xea   : > { %574 = vst.msk [vmem:[#allocation3 + $0xe8] sm:$0xff] %vm544_vm4, %v507_v29  ;;  %v642_v31 = vpop.permute.xlu0 %641 }
  0xeb   : > { %1226 = vrot.lane.b32.xlu1 %v2902_v48, %s2483_s23  ;;  %738 = vst.msk [vmem:[#allocation3] sm:$0xff] %vm737_vm5, %v642_v31 }
  0xec   : > { %1418 = vrot.lane.b32.xlu0 %v2751_v54, %s2484_s28 }
  0xed   : > { %v511_v42 = vpop.permute.xlu1 %510 }
  0xee   : > { %576 = vst.msk [vmem:[#allocation3 + $0xf8] sm:$0xff] %vm544_vm4, %v511_v42  ;;  %v646_v5 = vpop.permute.xlu0 %645 }
  0xef   : > { %1452 = vrot.lane.b32.xlu1 %v2813_v9, %s2484_s28  ;;  %740 = vst.msk [vmem:[#allocation3 + $0x10] sm:$0xff] %vm737_vm5, %v646_v5 }
  0xf0   : > { %1643 = vrot.lane.b32.xlu0 %v2836_v15, %s2485_s29 }
  0xf1   : > { %v644_v25 = vpop.permute.xlu1 %643 }
  0xf2   : > { %739 = vst.msk [vmem:[#allocation3 + $0x8] sm:$0xff] %vm737_vm5, %v644_v25  ;;  %v650_v48 = vpop.permute.xlu0 %649 }
  0xf3   : > { %1420 = vrot.lane.b32.xlu1 %v2768_v59, %s2484_s28  ;;  %742 = vst.msk [vmem:[#allocation3 + $0x20] sm:$0xff] %vm737_vm5, %v650_v48  ;;  %v969_v48 = vld [vmem:[#allocation2 + $0x61] sm:$0xff] }
  0xf4   : > { %1611 = vrot.lane.b32.xlu0 %v2694_v30, %s2485_s29 }
  0xf5   : > { %v648_v14 = vpop.permute.xlu1 %647 }
  0xf6   : > { %741 = vst.msk [vmem:[#allocation3 + $0x18] sm:$0xff] %vm737_vm5, %v648_v14  ;;  %v654_v38 = vpop.permute.xlu0 %653 }
  0xf7   : > { %1645 = vrot.lane.b32.xlu1 %v2862_v22, %s2485_s29  ;;  %744 = vst.msk [vmem:[#allocation3 + $0x30] sm:$0xff] %vm737_vm5, %v654_v38 }
  0xf8   : > { %1836 = vrot.lane.b32.xlu0 %v3055_v36, %s2486_s30 }
  0xf9   : > { %v652_v39 = vpop.permute.xlu1 %651 }
  0xfa   : > { %743 = vst.msk [vmem:[#allocation3 + $0x28] sm:$0xff] %vm737_vm5, %v652_v39  ;;  %v658_v40 = vpop.permute.xlu0 %657 }
  0xfb   : > { %1613 = vrot.lane.b32.xlu1 %v2713_v37, %s2485_s29  ;;  %746 = vst.msk [vmem:[#allocation3 + $0x40] sm:$0xff] %vm737_vm5, %v658_v40  ;;  %v970_v40 = vld [vmem:[#allocation2 + $0x69] sm:$0xff] }
  0xfc   : > { %1804 = vrot.lane.b32.xlu0 %v2897_v44, %s2486_s30 }
  0xfd   : > { %v656_v4 = vpop.permute.xlu1 %655 }
  0xfe   : > { %745 = vst.msk [vmem:[#allocation3 + $0x38] sm:$0xff] %vm737_vm5, %v656_v4  ;;  %v662_v10 = vpop.permute.xlu0 %661 }
  0xff   : > { %1838 = vrot.lane.b32.xlu1 %v3067_v43, %s2486_s30  ;;  %748 = vst.msk [vmem:[#allocation3 + $0x50] sm:$0xff] %vm737_vm5, %v662_v10 }
 0x100   : > { %681 = vrot.lane.b32.xlu0 %v2988_v6, %s2480_s14 }
 0x101   : > { %v660_v23 = vpop.permute.xlu1 %659 }
 0x102   : > { %747 = vst.msk [vmem:[#allocation3 + $0x48] sm:$0xff] %vm737_vm5, %v660_v23  ;;  %v666_v27 = vpop.permute.xlu0 %665 }
 0x103   : > { %1806 = vrot.lane.b32.xlu1 %v2910_v51, %s2486_s30  ;;  %750 = vst.msk [vmem:[#allocation3 + $0x60] sm:$0xff] %vm737_vm5, %v666_v27 }
 0x104   : > { %874 = vrot.lane.b32.xlu0 %v2805_v7, %s2481_s20 }
 0x105   : > { %v664_v34 = vpop.permute.xlu1 %663 }
 0x106   : > { %749 = vst.msk [vmem:[#allocation3 + $0x58] sm:$0xff] %vm737_vm5, %v664_v34  ;;  %v670_v35 = vpop.permute.xlu0 %669 }
 0x107   : > { %683 = vrot.lane.b32.xlu1 %v2980_v2, %s2480_s14  ;;  %752 = vst.msk [vmem:[#allocation3 + $0x70] sm:$0xff] %vm737_vm5, %v670_v35 }
 0x108   : > { %842 = vrot.lane.b32.xlu0 %v2751_v54, %s2481_s20 }
 0x109   : > { %v668_v6 = vpop.permute.xlu1 %667 }
 0x10a   : > { %751 = vst.msk [vmem:[#allocation3 + $0x68] sm:$0xff] %vm737_vm5, %v668_v6  ;;  %v674_v45 = vpop.permute.xlu0 %673  ;;  %v1565_v6 = vld [vmem:[#allocation2 + $0x139] sm:$0xff] }
 0x10b   : > { %876 = vrot.lane.b32.xlu1 %v2813_v9, %s2481_s20  ;;  %754 = vst.msk [vmem:[#allocation3 + $0x80] sm:$0xff] %vm737_vm5, %v674_v45 }
 0x10c   : > { %1067 = vrot.lane.b32.xlu0 %v2836_v15, %s2482_s22 }
 0x10d   : > { %v672_v7 = vpop.permute.xlu1 %671 }
 0x10e   : > { %753 = vst.msk [vmem:[#allocation3 + $0x78] sm:$0xff] %vm737_vm5, %v672_v7  ;;  %v678_v2 = vpop.permute.xlu0 %677 }
 0x10f   : > { %844 = vrot.lane.b32.xlu1 %v2768_v59, %s2481_s20  ;;  %756 = vst.msk [vmem:[#allocation3 + $0x90] sm:$0xff] %vm737_vm5, %v678_v2  ;;  %v1549_v2 = vld [vmem:[#allocation2 + $0x79] sm:$0xff] }
 0x110   : > { %1035 = vrot.lane.b32.xlu0 %v2694_v30, %s2482_s22 }
 0x111   : > { %v676_v54 = vpop.permute.xlu1 %675 }
 0x112   : > { %755 = vst.msk [vmem:[#allocation3 + $0x88] sm:$0xff] %vm737_vm5, %v676_v54  ;;  %v869_v9 = vpop.permute.xlu0 %868 }
 0x113   : > { %1069 = vrot.lane.b32.xlu1 %v2862_v22, %s2482_s22  ;;  %948 = vst.msk [vmem:[#allocation3 + $0x88] sm:$0xff] %vm930_vm6, %v869_v9  ;;  %v3225_v9 = vld [vmem:[#allocation2 + $0x13a] sm:$0xff] }
 0x114   : > { %1260 = vrot.lane.b32.xlu0 %v3055_v36, %s2483_s23 }
 0x115   : > { %v867_v15 = vpop.permute.xlu1 %866 }
 0x116   : > { %947 = vst.msk [vmem:[#allocation3 + $0x80] sm:$0xff] %vm930_vm6, %v867_v15  ;;  %v837_v59 = vpop.permute.xlu0 %836 }
 0x117   : > { %1037 = vrot.lane.b32.xlu1 %v2713_v37, %s2482_s22  ;;  %932 = vst.msk [vmem:[#allocation3 + $0x8] sm:$0xff] %vm930_vm6, %v837_v59  ;;  %v1550_v59 = vld [vmem:[#allocation2 + $0x81] sm:$0xff] }
 0x118   : > { %1228 = vrot.lane.b32.xlu0 %v2897_v44, %s2483_s23 }
 0x119   : > { %v835_v30 = vpop.permute.xlu1 %834 }
 0x11a   : > { %931 = vst.msk [vmem:[#allocation3] sm:$0xff] %vm930_vm6, %v835_v30  ;;  %v1062_v22 = vpop.permute.xlu0 %1061 }
 0x11b   : > { %1262 = vrot.lane.b32.xlu1 %v3067_v43, %s2483_s23  ;;  %1141 = vst.msk [vmem:[#allocation3 + $0x88] sm:$0xff] %vm1123_vm7, %v1062_v22 }
 0x11c   : > { %1454 = vrot.lane.b32.xlu0 %v2811_v8, %s2484_s28 }
 0x11d   : > { %v1060_v47 = vpop.permute.xlu1 %1059 }
 0x11e   : > { %1140 = vst.msk [vmem:[#allocation3 + $0x80] sm:$0xff] %vm1123_vm7, %v1060_v47  ;;  %v1030_v37 = vpop.permute.xlu0 %1029  ;;  %v3236_v47 = vld [vmem:[#allocation2 + $0x142] sm:$0xff] }
 0x11f   : > { %1230 = vrot.lane.b32.xlu1 %v2910_v51, %s2483_s23  ;;  %1125 = vst.msk [vmem:[#allocation3 + $0x8] sm:$0xff] %vm1123_vm7, %v1030_v37 }
 0x120   : > { %1422 = vrot.lane.b32.xlu0 %v2766_v58, %s2484_s28 }
 0x121   : > { %v1028_v44 = vpop.permute.xlu1 %1027 }
 0x122   : > { %1124 = vst.msk [vmem:[#allocation3] sm:$0xff] %vm1123_vm7, %v1028_v44  ;;  %v1255_v49 = vpop.permute.xlu0 %1254 }
 0x123   : > { %1456 = vrot.lane.b32.xlu1 %v2826_v13, %s2484_s28  ;;  %1334 = vst.msk [vmem:[#allocation3 + $0x88] sm:$0xff] %vm1316_vm8, %v1255_v49 }
 0x124   : > { %1647 = vrot.lane.b32.xlu0 %v2852_v19, %s2485_s29 }
 0x125   : > { %v1253_v57 = vpop.permute.xlu1 %1252 }
 0x126   : > { %1333 = vst.msk [vmem:[#allocation3 + $0x80] sm:$0xff] %vm1316_vm8, %v1253_v57  ;;  %v1223_v51 = vpop.permute.xlu0 %1222  ;;  %v284_v57 = vld [vmem:[%s2569_s7 + $0xf0] sm:$0xff] }
 0x127   : > { %1424 = vrot.lane.b32.xlu1 %v2782_v61, %s2484_s28  ;;  %1318 = vst.msk [vmem:[#allocation3 + $0x8] sm:$0xff] %vm1316_vm8, %v1223_v51  ;;  %v285_v51 = vld [vmem:[%s2569_s7 + $0xf8] sm:$0xff]  ;;  %s2283_s7 = sshll.u32 %s2534_s19, 8 }
 0x128   : > { %1615 = vrot.lane.b32.xlu0 %v2702_v32, %s2485_s29  ;;  %v3149_v32 = vld [vmem:[#allocation2 + $0x12a] sm:$0xff]  ;;  %318 = vst.msk [vmem:[#allocation2 + $0x181] sm:$0xff] %vm287_vm3, %v284_v57  ;;  %319 = vst.msk [vmem:[#allocation2 + $0x189] sm:$0xff] %vm287_vm3, %v285_v51  ;;  %s3600_s12 = scalar_lea.hbm %s3652_s2, %s2283_s7 }
 0x129   : > { %v1221_v46 = vpop.permute.xlu1 %1220 }
 0x12a   : > { %1317 = vst.msk [vmem:[#allocation3] sm:$0xff] %vm1316_vm8, %v1221_v46  ;;  %v1449_v56 = vpop.permute.xlu0 %1448 }
 0x12b   : > { %1649 = vrot.lane.b32.xlu1 %v2873_v26, %s2485_s29  ;;  %1528 = vst.msk [vmem:[#allocation3 + $0x88] sm:$0xff] %vm1510_vm9, %v1449_v56 }
 0x12c   : > { %1840 = vrot.lane.b32.xlu0 %v3137_v53, %s2486_s30 }
 0x12d   : > { %v1447_v11 = vpop.permute.xlu1 %1446 }
 0x12e   : > { %1527 = vst.msk [vmem:[#allocation3 + $0x80] sm:$0xff] %vm1510_vm9, %v1447_v11  ;;  %v1417_v55 = vpop.permute.xlu0 %1416 }
 0x12f   : > { %1617 = vrot.lane.b32.xlu1 %v2725_v41, %s2485_s29  ;;  %1512 = vst.msk [vmem:[#allocation3 + $0x8] sm:$0xff] %vm1510_vm9, %v1417_v55 }
 0x130   : > { %1808 = vrot.lane.b32.xlu0 %v2904_v50, %s2486_s30 }
 0x131   : > { %v1415_v28 = vpop.permute.xlu1 %1414 }
 0x132   : > { %1511 = vst.msk [vmem:[#allocation3] sm:$0xff] %vm1510_vm9, %v1415_v28  ;;  %v1642_v18 = vpop.permute.xlu0 %1641 }
 0x133   : > { %1842 = vrot.lane.b32.xlu1 %v3149_v32, %s2486_s30  ;;  %1721 = vst.msk [vmem:[#allocation3 + $0x88] sm:$0xff] %vm1703_vm10, %v1642_v18 }
 0x134   : > { %685 = vrot.lane.b32.xlu0 %v3055_v36, %s2480_s14 }
 0x135   : > { %v1640_v41 = vpop.permute.xlu1 %1639 }
 0x136   : > { %1720 = vst.msk [vmem:[#allocation3 + $0x80] sm:$0xff] %vm1703_vm10, %v1640_v41  ;;  %v1610_v29 = vpop.permute.xlu0 %1609 }
 0x137   : > { %1810 = vrot.lane.b32.xlu1 %v2918_v0, %s2486_s30  ;;  %1705 = vst.msk [vmem:[#allocation3 + $0x8] sm:$0xff] %vm1703_vm10, %v1610_v29  ;;  %v1164_v29 = vld [vmem:[#allocation2 + $0x7a] sm:$0xff] }
 0x138   : > { %878 = vrot.lane.b32.xlu0 %v2811_v8, %s2481_s20 }
 0x139   : > { %v1608_v31 = vpop.permute.xlu1 %1607 }
 0x13a   : > { %1704 = vst.msk [vmem:[#allocation3] sm:$0xff] %vm1703_vm10, %v1608_v31  ;;  %v1835_v42 = vpop.permute.xlu0 %1834 }
 0x13b   : > { %687 = vrot.lane.b32.xlu1 %v3067_v43, %s2480_s14  ;;  %1914 = vst.msk [vmem:[#allocation3 + $0x88] sm:$0xff] %vm1896_vm11, %v1835_v42 }
 0x13c   : > { %846 = vrot.lane.b32.xlu0 %v2766_v58, %s2481_s20 }
 0x13d   : > { %v1833_v5 = vpop.permute.xlu1 %1832 }
 0x13e   : > { %1913 = vst.msk [vmem:[#allocation3 + $0x80] sm:$0xff] %vm1896_vm11, %v1833_v5  ;;  %v1803_v25 = vpop.permute.xlu0 %1802 }
 0x13f   : > { %880 = vrot.lane.b32.xlu1 %v2826_v13, %s2481_s20  ;;  %1898 = vst.msk [vmem:[#allocation3 + $0x8] sm:$0xff] %vm1896_vm11, %v1803_v25 }
 0x140   : > { %1071 = vrot.lane.b32.xlu0 %v2852_v19, %s2482_s22 }
 0x141   : > { %v1801_v8 = vpop.permute.xlu1 %1800 }
 0x142   : > { %1897 = vst.msk [vmem:[#allocation3] sm:$0xff] %vm1896_vm11, %v1801_v8  ;;  %v871_v14 = vpop.permute.xlu0 %870  ;;  %v1946_v58 = vld [vmem:[#allocation3 + $0x88] sm:$0xff]  ;;  %v1165_v8 = vld [vmem:[#allocation2 + $0x82] sm:$0xff] }
 0x143   : > { %848 = vrot.lane.b32.xlu1 %v2782_v61, %s2481_s20  ;;  %949 = vst.msk [vmem:[#allocation3 + $0x90] sm:$0xff] %vm930_vm6, %v871_v14 }
 0x144   : > { %1039 = vrot.lane.b32.xlu0 %v969_v48, %s2482_s22 }
 0x145   : > { %v680_v13 = vpop.permute.xlu1 %679  ;;  %v1945_v36 = vld [vmem:[#allocation3 + $0x80] sm:$0xff] }
 0x146   : > { %757 = vst.msk [vmem:[#allocation3 + $0x98] sm:$0xff] %vm737_vm5, %v680_v13  ;;  %v2318_v38 = vpack.c.bf16 %v1946_v58, %v1945_v36  ;;  %v839_v39 = vpop.permute.xlu0 %838  ;;  %v1930_v61 = vld [vmem:[#allocation3 + $0x8] sm:$0xff] }
 0x147   : > { %1073 = vrot.lane.b32.xlu1 %v2873_v26, %s2482_s22  ;;  %933 = vst.msk [vmem:[#allocation3 + $0x10] sm:$0xff] %vm930_vm6, %v839_v39  ;;  %v1567_v13 = vld [vmem:[#allocation2 + $0x151] sm:$0xff] }
 0x148   : > { %2320 = vmatprep.subr.msk.bf16.mxu0 %vm3184_vm13, %v2318_v38  ;;  %1264 = vrot.lane.b32.xlu0 %v3137_v53, %s2483_s23  ;;  %v1551_v39 = vld [vmem:[#allocation2 + $0x91] sm:$0xff] }
 0x149   : > { %v873_v43 = vpop.permute.xlu1 %872  ;;  %v1929_v4 = vld [vmem:[#allocation3] sm:$0xff] }
 0x14a   : > { %950 = vst.msk [vmem:[#allocation3 + $0x98] sm:$0xff] %vm930_vm6, %v873_v43  ;;  %v2321_v10 = vpack.c.bf16 %v1930_v61, %v1929_v4  ;;  %v1064_v23 = vpop.permute.xlu0 %1063  ;;  %v3306_v43 = vld [vmem:[#allocation2 + $0x152] sm:$0xff] }
 0x14b   : > { %1041 = vrot.lane.b32.xlu1 %v970_v40, %s2482_s22  ;;  %1142 = vst.msk [vmem:[#allocation3 + $0x90] sm:$0xff] %vm1123_vm7, %v1064_v23 }
 0x14c   : > { %2323 = vmatpush3.bf16.xpose.msk.msra.mxu0 %vm3184_vm13, %v2321_v10  ;;  %1232 = vrot.lane.b32.xlu0 %v2904_v50, %s2483_s23  ;;  %v1552_v10 = vld [vmem:[#allocation2 + $0x99] sm:$0xff] }
 0x14d   : > { %v841_v26 = vpop.permute.xlu1 %840 }
 0x14e   : > { %934 = vst.msk [vmem:[#allocation3 + $0x18] sm:$0xff] %vm930_vm6, %v841_v26  ;;  %v1032_v27 = vpop.permute.xlu0 %1031  ;;  %v1744_v26 = vld [vmem:[#allocation2 + $0x92] sm:$0xff] }
 0x14f   : > { %1266 = vrot.lane.b32.xlu1 %v3149_v32, %s2483_s23  ;;  %1126 = vst.msk [vmem:[#allocation3 + $0x10] sm:$0xff] %vm1123_vm7, %v1032_v27 }
 0x150   : > { %1458 = vrot.lane.b32.xlu0 %v2824_v12, %s2484_s28 }
 0x151   : > { %v1066_v34 = vpop.permute.xlu1 %1065 }
 0x152   : > { %1143 = vst.msk [vmem:[#allocation3 + $0x98] sm:$0xff] %vm1123_vm7, %v1066_v34  ;;  %v1257_v35 = vpop.permute.xlu0 %1256  ;;  %v3316_v34 = vld [vmem:[#allocation2 + $0x15a] sm:$0xff] }
 0x153   : > { %1234 = vrot.lane.b32.xlu1 %v2918_v0, %s2483_s23  ;;  %1335 = vst.msk [vmem:[#allocation3 + $0x90] sm:$0xff] %vm1316_vm8, %v1257_v35 }
 0x154   : > { %1426 = vrot.lane.b32.xlu0 %v2770_v60, %s2484_s28 }
 0x155   : > { %v1034_v50 = vpop.permute.xlu1 %1033 }
 0x156   : > { %1127 = vst.msk [vmem:[#allocation3 + $0x18] sm:$0xff] %vm1123_vm7, %v1034_v50  ;;  %v1225_v45 = vpop.permute.xlu0 %1224 }
 0x157   : > { %1460 = vrot.lane.b32.xlu1 %v2842_v17, %s2484_s28  ;;  %1319 = vst.msk [vmem:[#allocation3 + $0x10] sm:$0xff] %vm1316_vm8, %v1225_v45 }
 0x158   : > { %1651 = vrot.lane.b32.xlu0 %v1565_v6, %s2485_s29 }
 0x159   : > { %v1259_v7 = vpop.permute.xlu1 %1258 }
 0x15a   : > { %1336 = vst.msk [vmem:[#allocation3 + $0x98] sm:$0xff] %vm1316_vm8, %v1259_v7  ;;  %v1451_v0 = vpop.permute.xlu0 %1450 }
 0x15b   : > { %1428 = vrot.lane.b32.xlu1 %v2786_v63, %s2484_s28  ;;  %1529 = vst.msk [vmem:[#allocation3 + $0x90] sm:$0xff] %vm1510_vm9, %v1451_v0  ;;  %v780_v0 = vld [vmem:[#allocation2 + $0x90] sm:$0xff] }
 0x15c   : > { %1619 = vrot.lane.b32.xlu0 %v1549_v2, %s2485_s29 }
 0x15d   : > { %v1227_v54 = vpop.permute.xlu1 %1226 }
 0x15e   : > { %1320 = vst.msk [vmem:[#allocation3 + $0x18] sm:$0xff] %vm1316_vm8, %v1227_v54  ;;  %v1419_v15 = vpop.permute.xlu0 %1418 }
 0x15f   : > { %1653 = vrot.lane.b32.xlu1 %v2880_v33, %s2485_s29  ;;  %1513 = vst.msk [vmem:[#allocation3 + $0x10] sm:$0xff] %vm1510_vm9, %v1419_v15 }
 0x160   : > { %1844 = vrot.lane.b32.xlu0 %v3225_v9, %s2486_s30 }
 0x161   : > { %v1453_v30 = vpop.permute.xlu1 %1452 }
 0x162   : > { %1530 = vst.msk [vmem:[#allocation3 + $0x98] sm:$0xff] %vm1510_vm9, %v1453_v30  ;;  %v1644_v22 = vpop.permute.xlu0 %1643 }
 0x163   : > { %1621 = vrot.lane.b32.xlu1 %v1550_v59, %s2485_s29  ;;  %1722 = vst.msk [vmem:[#allocation3 + $0x90] sm:$0xff] %vm1703_vm10, %v1644_v22 }
 0x164   : > { %1812 = vrot.lane.b32.xlu0 %v2912_v52, %s2486_s30 }
 0x165   : > { %v1421_v33 = vpop.permute.xlu1 %1420 }
 0x166   : > { %1514 = vst.msk [vmem:[#allocation3 + $0x18] sm:$0xff] %vm1510_vm9, %v1421_v33  ;;  %v1612_v37 = vpop.permute.xlu0 %1611 }
 0x167   : > { %1846 = vrot.lane.b32.xlu1 %v3236_v47, %s2486_s30  ;;  %1706 = vst.msk [vmem:[#allocation3 + $0x10] sm:$0xff] %vm1703_vm10, %v1612_v37 }
 0x168   : > { %689 = vrot.lane.b32.xlu0 %v3137_v53, %s2480_s14 }
 0x169   : > { %v1646_v44 = vpop.permute.xlu1 %1645 }
 0x16a   : > { %1723 = vst.msk [vmem:[#allocation3 + $0x98] sm:$0xff] %vm1703_vm10, %v1646_v44  ;;  %v1837_v49 = vpop.permute.xlu0 %1836 }
 0x16b   : > { %1814 = vrot.lane.b32.xlu1 %v2923_v3, %s2486_s30  ;;  %1915 = vst.msk [vmem:[#allocation3 + $0x90] sm:$0xff] %vm1896_vm11, %v1837_v49 }
 0x16c   : > { %882 = vrot.lane.b32.xlu0 %v2824_v12, %s2481_s20 }
 0x16d   : > { %v1614_v52 = vpop.permute.xlu1 %1613 }
 0x16e   : > { %1707 = vst.msk [vmem:[#allocation3 + $0x18] sm:$0xff] %vm1703_vm10, %v1614_v52  ;;  %v1805_v46 = vpop.permute.xlu0 %1804 }
 0x16f   : > { %691 = vrot.lane.b32.xlu1 %v3149_v32, %s2480_s14  ;;  %1899 = vst.msk [vmem:[#allocation3 + $0x10] sm:$0xff] %vm1896_vm11, %v1805_v46 }
 0x170   : > { %850 = vrot.lane.b32.xlu0 %v2770_v60, %s2481_s20  ;;  %v988_v60 = vld [vmem:[#allocation2 + $0x141] sm:$0xff] }
 0x171   : > { %v1839_v3 = vpop.permute.xlu1 %1838 }
 0x172   : > { %1916 = vst.msk [vmem:[#allocation3 + $0x98] sm:$0xff] %vm1896_vm11, %v1839_v3  ;;  %v682_v53 = vpop.permute.xlu0 %681  ;;  %v1947_v11 = vld [vmem:[#allocation3 + $0x90] sm:$0xff]  ;;  %v1360_v3 = vld [vmem:[#allocation2 + $0xa8] sm:$0xff] }
 0x173   : > { %884 = vrot.lane.b32.xlu1 %v2842_v17, %s2481_s20  ;;  %758 = vst.msk [vmem:[#allocation3 + $0xa0] sm:$0xff] %vm737_vm5, %v682_v53 }
 0x174   : > { %1075 = vrot.lane.b32.xlu0 %v1565_v6, %s2482_s22  ;;  %v1745_v6 = vld [vmem:[#allocation2 + $0x9a] sm:$0xff] }
 0x175   : > { %v1807_v12 = vpop.permute.xlu1 %1806 }
 0x176   : > { %1900 = vst.msk [vmem:[#allocation3 + $0x18] sm:$0xff] %vm1896_vm11, %v1807_v12  ;;  %v875_v56 = vpop.permute.xlu0 %874  ;;  %v1931_v18 = vld [vmem:[#allocation3 + $0x10] sm:$0xff] }
 0x177   : > { %852 = vrot.lane.b32.xlu1 %v2786_v63, %s2481_s20  ;;  %951 = vst.msk [vmem:[#allocation3 + $0xa0] sm:$0xff] %vm930_vm6, %v875_v56  ;;  %v1569_v56 = vld [vmem:[#allocation2 + $0x169] sm:$0xff] }
 0x178   : > { %1043 = vrot.lane.b32.xlu0 %v1549_v2, %s2482_s22 }
 0x179   : > { %v684_v55 = vpop.permute.xlu1 %683  ;;  %v1948_v32 = vld [vmem:[#allocation3 + $0x98] sm:$0xff] }
 0x17a   : > { %759 = vst.msk [vmem:[#allocation3 + $0xa8] sm:$0xff] %vm737_vm5, %v684_v55  ;;  %v2324_v17 = vpack.c.bf16 %v1948_v32, %v1947_v11  ;;  %v843_v28 = vpop.permute.xlu0 %842  ;;  %v1553_v55 = vld [vmem:[#allocation2 + $0xa9] sm:$0xff] }
 0x17b   : > { %1077 = vrot.lane.b32.xlu1 %v988_v60, %s2482_s22  ;;  %935 = vst.msk [vmem:[#allocation3 + $0x20] sm:$0xff] %vm930_vm6, %v843_v28 }
 0x17c   : > { %2326 = vmatprep.subr.msk.bf16.mxu0 %vm3184_vm13, %v2324_v17  ;;  %1268 = vrot.lane.b32.xlu0 %v3225_v9, %s2483_s23  ;;  %v1570_v17 = vld [vmem:[#allocation2 + $0x171] sm:$0xff] }
 0x17d   : > { %v877_v63 = vpop.permute.xlu1 %876  ;;  %v1932_v41 = vld [vmem:[#allocation3 + $0x18] sm:$0xff] }
 0x17e   : > { %952 = vst.msk [vmem:[#allocation3 + $0xa8] sm:$0xff] %vm930_vm6, %v877_v63  ;;  %v2327_v31 = vpack.c.bf16 %v1932_v41, %v1931_v18  ;;  %v1068_v42 = vpop.permute.xlu0 %1067  ;;  %v3377_v18 = vld [vmem:[#allocation2 + $0x16a] sm:$0xff] }
 0x17f   : > { %1045 = vrot.lane.b32.xlu1 %v1550_v59, %s2482_s22  ;;  %1144 = vst.msk [vmem:[#allocation3 + $0xa0] sm:$0xff] %vm1123_vm7, %v1068_v42  ;;  %v1554_v41 = vld [vmem:[#allocation2 + $0xb1] sm:$0xff] }
 0x180   : > { %2329 = vmatpush3.bf16.xpose.msk.msra.mxu0 %vm3184_vm13, %v2327_v31  ;;  %1236 = vrot.lane.b32.xlu0 %v1164_v29, %s2483_s23  ;;  %v1746_v31 = vld [vmem:[#allocation2 + $0xaa] sm:$0xff] }
 0x181   : > { %v845_v5 = vpop.permute.xlu1 %844 }
 0x182   : > { %936 = vst.msk [vmem:[#allocation3 + $0x28] sm:$0xff] %vm930_vm6, %v845_v5  ;;  %v1036_v25 = vpop.permute.xlu0 %1035  ;;  %v3387_v5 = vld [vmem:[#allocation2 + $0x172] sm:$0xff] }
 0x183   : > { %1270 = vrot.lane.b32.xlu1 %v3236_v47, %s2483_s23  ;;  %1128 = vst.msk [vmem:[#allocation3 + $0x20] sm:$0xff] %vm1123_vm7, %v1036_v25 }
 0x184   : > { %1462 = vrot.lane.b32.xlu0 %v2840_v16, %s2484_s28 }
 0x185   : > { %v1070_v48 = vpop.permute.xlu1 %1069 }
 0x186   : > { %1145 = vst.msk [vmem:[#allocation3 + $0xa8] sm:$0xff] %vm1123_vm7, %v1070_v48  ;;  %v1261_v14 = vpop.permute.xlu0 %1260  ;;  %v1747_v48 = vld [vmem:[#allocation2 + $0xb2] sm:$0xff] }
 0x187   : > { %1238 = vrot.lane.b32.xlu1 %v1165_v8, %s2483_s23  ;;  %1337 = vst.msk [vmem:[#allocation3 + $0xa0] sm:$0xff] %vm1316_vm8, %v1261_v14 }
 0x188   : > { %1430 = vrot.lane.b32.xlu0 %v2784_v62, %s2484_s28  ;;  %v1568_v62 = vld [vmem:[#allocation2 + $0x159] sm:$0xff] }
 0x189   : > { %v1038_v58 = vpop.permute.xlu1 %1037 }
 0x18a   : > { %1129 = vst.msk [vmem:[#allocation3 + $0x28] sm:$0xff] %vm1123_vm7, %v1038_v58  ;;  %v1229_v36 = vpop.permute.xlu0 %1228  ;;  %v798_v58 = vld [vmem:[#allocation2 + $0x168] sm:$0xff] }
 0x18b   : > { %1464 = vrot.lane.b32.xlu1 %v2858_v21, %s2484_s28  ;;  %1321 = vst.msk [vmem:[#allocation3 + $0x20] sm:$0xff] %vm1316_vm8, %v1229_v36 }
 0x18c   : > { %1655 = vrot.lane.b32.xlu0 %v1567_v13, %s2485_s29 }
 0x18d   : > { %v1263_v38 = vpop.permute.xlu1 %1262 }
 0x18e   : > { %1338 = vst.msk [vmem:[#allocation3 + $0xa8] sm:$0xff] %vm1316_vm8, %v1263_v38  ;;  %v1455_v61 = vpop.permute.xlu0 %1454 }
 0x18f   : > { %1432 = vrot.lane.b32.xlu1 %v2795_v1, %s2484_s28  ;;  %1531 = vst.msk [vmem:[#allocation3 + $0xa0] sm:$0xff] %vm1510_vm9, %v1455_v61 }
 0x190   : > { %1623 = vrot.lane.b32.xlu0 %v1551_v39, %s2485_s29 }
 0x191   : > { %v1231_v40 = vpop.permute.xlu1 %1230 }
 0x192   : > { %1322 = vst.msk [vmem:[#allocation3 + $0x28] sm:$0xff] %vm1316_vm8, %v1231_v40  ;;  %v1423_v4 = vpop.permute.xlu0 %1422 }
 0x193   : > { %1657 = vrot.lane.b32.xlu1 %v1568_v62, %s2485_s29  ;;  %1515 = vst.msk [vmem:[#allocation3 + $0x20] sm:$0xff] %vm1510_vm9, %v1423_v4 }
 0x194   : > { %1848 = vrot.lane.b32.xlu0 %v3306_v43, %s2486_s30 }
 0x195   : > { %v1457_v23 = vpop.permute.xlu1 %1456 }
 0x196   : > { %1532 = vst.msk [vmem:[#allocation3 + $0xa8] sm:$0xff] %vm1510_vm9, %v1457_v23  ;;  %v1648_v27 = vpop.permute.xlu0 %1647 }
 0x197   : > { %1625 = vrot.lane.b32.xlu1 %v1552_v10, %s2485_s29  ;;  %1724 = vst.msk [vmem:[#allocation3 + $0xa0] sm:$0xff] %vm1703_vm10, %v1648_v27 }
 0x198   : > { %1816 = vrot.lane.b32.xlu0 %v1744_v26, %s2486_s30 }
 0x199   : > { %v1425_v35 = vpop.permute.xlu1 %1424 }
 0x19a   : > { %1516 = vst.msk [vmem:[#allocation3 + $0x28] sm:$0xff] %vm1510_vm9, %v1425_v35  ;;  %v1616_v50 = vpop.permute.xlu0 %1615 }
 0x19b   : > { %1850 = vrot.lane.b32.xlu1 %v3316_v34, %s2486_s30  ;;  %1708 = vst.msk [vmem:[#allocation3 + $0x20] sm:$0xff] %vm1703_vm10, %v1616_v50 }
 0x19c   : > { %693 = vrot.lane.b32.xlu0 %v3225_v9, %s2480_s14 }
 0x19d   : > { %v1650_v45 = vpop.permute.xlu1 %1649 }
 0x19e   : > { %1725 = vst.msk [vmem:[#allocation3 + $0xa8] sm:$0xff] %vm1703_vm10, %v1650_v45  ;;  %v1841_v7 = vpop.permute.xlu0 %1840  ;;  %v1378_v45 = vld [vmem:[#allocation2 + $0x180] sm:$0xff] }
 0x19f   : > { %1818 = vrot.lane.b32.xlu1 %v1745_v6, %s2486_s30  ;;  %1917 = vst.msk [vmem:[#allocation3 + $0xa0] sm:$0xff] %vm1896_vm11, %v1841_v7 }
 0x1a0   : > { %886 = vrot.lane.b32.xlu0 %v2840_v16, %s2481_s20 }
 0x1a1   : > { %v1618_v2 = vpop.permute.xlu1 %1617 }
 0x1a2   : > { %1709 = vst.msk [vmem:[#allocation3 + $0x28] sm:$0xff] %vm1703_vm10, %v1618_v2  ;;  %v1809_v54 = vpop.permute.xlu0 %1808 }
 0x1a3   : > { %695 = vrot.lane.b32.xlu1 %v3236_v47, %s2480_s14  ;;  %1901 = vst.msk [vmem:[#allocation3 + $0x20] sm:$0xff] %vm1896_vm11, %v1809_v54 }
 0x1a4   : > { %854 = vrot.lane.b32.xlu0 %v780_v0, %s2481_s20  ;;  %v1362_v0 = vld [vmem:[#allocation2 + $0xc0] sm:$0xff] }
 0x1a5   : > { %v1843_v9 = vpop.permute.xlu1 %1842 }
 0x1a6   : > { %1918 = vst.msk [vmem:[#allocation3 + $0xa8] sm:$0xff] %vm1896_vm11, %v1843_v9  ;;  %v686_v15 = vpop.permute.xlu0 %685  ;;  %v1949_v30 = vld [vmem:[#allocation3 + $0xa0] sm:$0xff]  ;;  %v1379_v9 = vld [vmem:[#allocation2 + $0x188] sm:$0xff] }
 0x1a7   : > { %888 = vrot.lane.b32.xlu1 %v2858_v21, %s2481_s20  ;;  %760 = vst.msk [vmem:[#allocation3 + $0xb0] sm:$0xff] %vm737_vm5, %v686_v15 }
 0x1a8   : > { %1079 = vrot.lane.b32.xlu0 %v1567_v13, %s2482_s22 }
 0x1a9   : > { %v1811_v16 = vpop.permute.xlu1 %1810 }
 0x1aa   : > { %1902 = vst.msk [vmem:[#allocation3 + $0x28] sm:$0xff] %vm1896_vm11, %v1811_v16  ;;  %v879_v59 = vpop.permute.xlu0 %878  ;;  %v1933_v37 = vld [vmem:[#allocation3 + $0x20] sm:$0xff]  ;;  %v1571_v16 = vld [vmem:[#allocation2 + $0x181] sm:$0xff] }
 0x1ab   : > { %856 = vrot.lane.b32.xlu1 %v2795_v1, %s2481_s20  ;;  %953 = vst.msk [vmem:[#allocation3 + $0xb0] sm:$0xff] %vm930_vm6, %v879_v59 }
 0x1ac   : > { %1047 = vrot.lane.b32.xlu0 %v1551_v39, %s2482_s22 }
 0x1ad   : > { %v688_v22 = vpop.permute.xlu1 %687  ;;  %v1950_v47 = vld [vmem:[#allocation3 + $0xa8] sm:$0xff] }
 0x1ae   : > { %761 = vst.msk [vmem:[#allocation3 + $0xb8] sm:$0xff] %vm737_vm5, %v688_v22  ;;  %v2330_v21 = vpack.c.bf16 %v1950_v47, %v1949_v30  ;;  %v847_v33 = vpop.permute.xlu0 %846  ;;  %v1363_v30 = vld [vmem:[#allocation2 + $0xc8] sm:$0xff] }
 0x1af   : > { %1081 = vrot.lane.b32.xlu1 %v1568_v62, %s2482_s22  ;;  %937 = vst.msk [vmem:[#allocation3 + $0x30] sm:$0xff] %vm930_vm6, %v847_v33  ;;  %v1555_v47 = vld [vmem:[#allocation2 + $0xc1] sm:$0xff]  ;;  %v1572_v33 = vld [vmem:[#allocation2 + $0x189] sm:$0xff] }
 0x1b0   : > { %2332 = vmatprep.subr.msk.bf16.mxu0 %vm3184_vm13, %v2330_v21  ;;  %1272 = vrot.lane.b32.xlu0 %v3306_v43, %s2483_s23 }
 0x1b1   : > { %v881_v1 = vpop.permute.xlu1 %880  ;;  %v1934_v44 = vld [vmem:[#allocation3 + $0x28] sm:$0xff] }
 0x1b2   : > { %954 = vst.msk [vmem:[#allocation3 + $0xb8] sm:$0xff] %vm930_vm6, %v881_v1  ;;  %v2333_v49 = vpack.c.bf16 %v1934_v44, %v1933_v37  ;;  %v1072_v57 = vpop.permute.xlu0 %1071  ;;  %v1764_v1 = vld [vmem:[#allocation2 + $0x182] sm:$0xff] }
 0x1b3   : > { %1049 = vrot.lane.b32.xlu1 %v1552_v10, %s2482_s22  ;;  %1146 = vst.msk [vmem:[#allocation3 + $0xb0] sm:$0xff] %vm1123_vm7, %v1072_v57 }
 0x1b4   : > { %2335 = vmatpush3.bf16.xpose.msk.msra.mxu0 %vm3184_vm13, %v2333_v49  ;;  %1240 = vrot.lane.b32.xlu0 %v1744_v26, %s2483_s23  ;;  %v1556_v49 = vld [vmem:[#allocation2 + $0xc9] sm:$0xff] }
 0x1b5   : > { %v849_v51 = vpop.permute.xlu1 %848 }
 0x1b6   : > { %938 = vst.msk [vmem:[#allocation3 + $0x38] sm:$0xff] %vm930_vm6, %v849_v51  ;;  %v1040_v52 = vpop.permute.xlu0 %1039  ;;  %v1748_v51 = vld [vmem:[#allocation2 + $0xc2] sm:$0xff] }
 0x1b7   : > { %1274 = vrot.lane.b32.xlu1 %v3316_v34, %s2483_s23  ;;  %1130 = vst.msk [vmem:[#allocation3 + $0x30] sm:$0xff] %vm1123_vm7, %v1040_v52 }
 0x1b8   : > { %1466 = vrot.lane.b32.xlu0 %v2856_v20, %s2484_s28  ;;  %v1361_v20 = vld [vmem:[#allocation2 + $0xb0] sm:$0xff] }
 0x1b9   : > { %v1074_v46 = vpop.permute.xlu1 %1073 }
 0x1ba   : > { %1147 = vst.msk [vmem:[#allocation3 + $0xb8] sm:$0xff] %vm1123_vm7, %v1074_v46  ;;  %v1265_v53 = vpop.permute.xlu0 %1264  ;;  %v1765_v46 = vld [vmem:[#allocation2 + $0x18a] sm:$0xff] }
 0x1bb   : > { %1242 = vrot.lane.b32.xlu1 %v1745_v6, %s2483_s23  ;;  %1339 = vst.msk [vmem:[#allocation3 + $0xb0] sm:$0xff] %vm1316_vm8, %v1265_v53 }
 0x1bc   : > { %1434 = vrot.lane.b32.xlu0 %v1360_v3, %s2484_s28 }
 0x1bd   : > { %v1042_v12 = vpop.permute.xlu1 %1041 }
 0x1be   : > { %1131 = vst.msk [vmem:[#allocation3 + $0x38] sm:$0xff] %vm1123_vm7, %v1042_v12  ;;  %v1233_v11 = vpop.permute.xlu0 %1232  ;;  %v1749_v12 = vld [vmem:[#allocation2 + $0xca] sm:$0xff] }
 0x1bf   : > { %1468 = vrot.lane.b32.xlu1 %v2870_v24, %s2484_s28  ;;  %1323 = vst.msk [vmem:[#allocation3 + $0x30] sm:$0xff] %vm1316_vm8, %v1233_v11 }
 0x1c0   : > { %1659 = vrot.lane.b32.xlu0 %v1569_v56, %s2485_s29 }
 0x1c1   : > { %v1267_v60 = vpop.permute.xlu1 %1266 }
 0x1c2   : > { %1340 = vst.msk [vmem:[#allocation3 + $0xb8] sm:$0xff] %vm1316_vm8, %v1267_v60  ;;  %v1459_v32 = vpop.permute.xlu0 %1458 }
 0x1c3   : > { %1436 = vrot.lane.b32.xlu1 %v1361_v20, %s2484_s28  ;;  %1533 = vst.msk [vmem:[#allocation3 + $0xb0] sm:$0xff] %vm1510_vm9, %v1459_v32 }
 0x1c4   : > { %1627 = vrot.lane.b32.xlu0 %v1553_v55, %s2485_s29 }
 0x1c5   : > { %v1235_v28 = vpop.permute.xlu1 %1234 }
 0x1c6   : > { %1324 = vst.msk [vmem:[#allocation3 + $0x38] sm:$0xff] %vm1316_vm8, %v1235_v28  ;;  %v1427_v63 = vpop.permute.xlu0 %1426 }
 0x1c7   : > { %1661 = vrot.lane.b32.xlu1 %v1570_v17, %s2485_s29  ;;  %1517 = vst.msk [vmem:[#allocation3 + $0x30] sm:$0xff] %vm1510_vm9, %v1427_v63 }
 0x1c8   : > { %1852 = vrot.lane.b32.xlu0 %v3377_v18, %s2486_s30 }
 0x1c9   : > { %v1461_v29 = vpop.permute.xlu1 %1460 }
 0x1ca   : > { %1534 = vst.msk [vmem:[#allocation3 + $0xb8] sm:$0xff] %vm1510_vm9, %v1461_v29  ;;  %v1652_v42 = vpop.permute.xlu0 %1651 }
 0x1cb   : > { %1629 = vrot.lane.b32.xlu1 %v1554_v41, %s2485_s29  ;;  %1726 = vst.msk [vmem:[#allocation3 + $0xb0] sm:$0xff] %vm1703_vm10, %v1652_v42 }
 0x1cc   : > { %1820 = vrot.lane.b32.xlu0 %v1746_v31, %s2486_s30 }
 0x1cd   : > { %v1429_v25 = vpop.permute.xlu1 %1428 }
 0x1ce   : > { %1518 = vst.msk [vmem:[#allocation3 + $0x38] sm:$0xff] %vm1510_vm9, %v1429_v25  ;;  %v1620_v8 = vpop.permute.xlu0 %1619 }
 0x1cf   : > { %1854 = vrot.lane.b32.xlu1 %v3387_v5, %s2486_s30  ;;  %1710 = vst.msk [vmem:[#allocation3 + $0x30] sm:$0xff] %vm1703_vm10, %v1620_v8 }
 0x1d0   : > { %697 = vrot.lane.b32.xlu0 %v3306_v43, %s2480_s14 }
 0x1d1   : > { %v1654_v14 = vpop.permute.xlu1 %1653 }
 0x1d2   : > { %1727 = vst.msk [vmem:[#allocation3 + $0xb8] sm:$0xff] %vm1703_vm10, %v1654_v14  ;;  %v1845_v13 = vpop.permute.xlu0 %1844 }
 0x1d3   : > { %1822 = vrot.lane.b32.xlu1 %v1747_v48, %s2486_s30  ;;  %1919 = vst.msk [vmem:[#allocation3 + $0xb0] sm:$0xff] %vm1896_vm11, %v1845_v13 }
 0x1d4   : > { %890 = vrot.lane.b32.xlu0 %v798_v58, %s2481_s20  ;;  %v1380_v58 = vld [vmem:[#allocation2 + $0x198] sm:$0xff] }
 0x1d5   : > { %v1622_v36 = vpop.permute.xlu1 %1621 }
 0x1d6   : > { %1711 = vst.msk [vmem:[#allocation3 + $0x38] sm:$0xff] %vm1703_vm10, %v1622_v36  ;;  %v1813_v38 = vpop.permute.xlu0 %1812 }
 0x1d7   : > { %699 = vrot.lane.b32.xlu1 %v3316_v34, %s2480_s14  ;;  %1903 = vst.msk [vmem:[#allocation3 + $0x30] sm:$0xff] %vm1896_vm11, %v1813_v38  ;;  %v1364_v38 = vld [vmem:[#allocation2 + $0xd8] sm:$0xff] }
 0x1d8   : > { %858 = vrot.lane.b32.xlu0 %v1360_v3, %s2481_s20 }
 0x1d9   : > { %v1847_v39 = vpop.permute.xlu1 %1846 }
 0x1da   : > { %1920 = vst.msk [vmem:[#allocation3 + $0xb8] sm:$0xff] %vm1896_vm11, %v1847_v39  ;;  %v690_v61 = vpop.permute.xlu0 %689  ;;  %v1951_v43 = vld [vmem:[#allocation3 + $0xb0] sm:$0xff] }
 0x1db   : > { %892 = vrot.lane.b32.xlu1 %v2870_v24, %s2481_s20  ;;  %762 = vst.msk [vmem:[#allocation3 + $0xc0] sm:$0xff] %vm737_vm5, %v690_v61  ;;  %v1381_v61 = vld [vmem:[#allocation2 + $0x1a0] sm:$0xff] }
 0x1dc   : > { %1083 = vrot.lane.b32.xlu0 %v1569_v56, %s2482_s22 }
 0x1dd   : > { %v1815_v62 = vpop.permute.xlu1 %1814 }
 0x1de   : > { %1904 = vst.msk [vmem:[#allocation3 + $0x38] sm:$0xff] %vm1896_vm11, %v1815_v62  ;;  %v883_v40 = vpop.permute.xlu0 %882  ;;  %v1935_v26 = vld [vmem:[#allocation3 + $0x30] sm:$0xff] }
 0x1df   : > { %860 = vrot.lane.b32.xlu1 %v1361_v20, %s2481_s20  ;;  %955 = vst.msk [vmem:[#allocation3 + $0xc0] sm:$0xff] %vm930_vm6, %v883_v40  ;;  %v1573_v40 = vld [vmem:[#allocation2 + $0x199] sm:$0xff] }
 0x1e0   : > { %1051 = vrot.lane.b32.xlu0 %v1553_v55, %s2482_s22 }
 0x1e1   : > { %v692_v4 = vpop.permute.xlu1 %691  ;;  %v1952_v10 = vld [vmem:[#allocation3 + $0xb8] sm:$0xff] }
 0x1e2   : > { %763 = vst.msk [vmem:[#allocation3 + $0xc8] sm:$0xff] %vm737_vm5, %v692_v4  ;;  %v2336_v24 = vpack.c.bf16 %v1952_v10, %v1951_v43  ;;  %v851_v23 = vpop.permute.xlu0 %850  ;;  %v1365_v4 = vld [vmem:[#allocation2 + $0xe0] sm:$0xff] }
 0x1e3   : > { %1085 = vrot.lane.b32.xlu1 %v1570_v17, %s2482_s22  ;;  %939 = vst.msk [vmem:[#allocation3 + $0x40] sm:$0xff] %vm930_vm6, %v851_v23 }
 0x1e4   : > { %2338 = vmatprep.subr.msk.bf16.mxu0 %vm3184_vm13, %v2336_v24  ;;  %1276 = vrot.lane.b32.xlu0 %v3377_v18, %s2483_s23  ;;  %v1557_v24 = vld [vmem:[#allocation2 + $0xd9] sm:$0xff] }
 0x1e5   : > { %v885_v27 = vpop.permute.xlu1 %884  ;;  %v1936_v34 = vld [vmem:[#allocation3 + $0x38] sm:$0xff] }
 0x1e6   : > { %956 = vst.msk [vmem:[#allocation3 + $0xc8] sm:$0xff] %vm930_vm6, %v885_v27  ;;  %v2339_v35 = vpack.c.bf16 %v1936_v34, %v1935_v26  ;;  %v1076_v50 = vpop.permute.xlu0 %1075  ;;  %v1574_v26 = vld [vmem:[#allocation2 + $0x1a1] sm:$0xff] }
 0x1e7   : > { %1053 = vrot.lane.b32.xlu1 %v1554_v41, %s2482_s22  ;;  %1148 = vst.msk [vmem:[#allocation3 + $0xc0] sm:$0xff] %vm1123_vm7, %v1076_v50  ;;  %v1766_v34 = vld [vmem:[#allocation2 + $0x19a] sm:$0xff] }
 0x1e8   : > { %2341 = vmatpush3.bf16.xpose.msk.msra.mxu0 %vm3184_vm13, %v2339_v35  ;;  %1244 = vrot.lane.b32.xlu0 %v1746_v31, %s2483_s23  ;;  %v1558_v50 = vld [vmem:[#allocation2 + $0xe1] sm:$0xff] }
 0x1e9   : > { %v853_v6 = vpop.permute.xlu1 %852 }
 0x1ea   : > { %940 = vst.msk [vmem:[#allocation3 + $0x48] sm:$0xff] %vm930_vm6, %v853_v6  ;;  %v1044_v7 = vpop.permute.xlu0 %1043 }
 0x1eb   : > { %1278 = vrot.lane.b32.xlu1 %v3387_v5, %s2483_s23  ;;  %1132 = vst.msk [vmem:[#allocation3 + $0x40] sm:$0xff] %vm1123_vm7, %v1044_v7 }
 0x1ec   : > { %1470 = vrot.lane.b32.xlu0 %v1378_v45, %s2484_s28 }
 0x1ed   : > { %v1078_v2 = vpop.permute.xlu1 %1077 }
 0x1ee   : > { %1149 = vst.msk [vmem:[#allocation3 + $0xc8] sm:$0xff] %vm1123_vm7, %v1078_v2  ;;  %v1269_v54 = vpop.permute.xlu0 %1268  ;;  %v1767_v2 = vld [vmem:[#allocation2 + $0x1a2] sm:$0xff] }
 0x1ef   : > { %1246 = vrot.lane.b32.xlu1 %v1747_v48, %s2483_s23  ;;  %1341 = vst.msk [vmem:[#allocation3 + $0xc0] sm:$0xff] %vm1316_vm8, %v1269_v54 }
 0x1f0   : > { %1438 = vrot.lane.b32.xlu0 %v1362_v0, %s2484_s28 }
 0x1f1   : > { %v1046_v15 = vpop.permute.xlu1 %1045 }
 0x1f2   : > { %1133 = vst.msk [vmem:[#allocation3 + $0x48] sm:$0xff] %vm1123_vm7, %v1046_v15  ;;  %v1237_v59 = vpop.permute.xlu0 %1236  ;;  %v3516_v15 = vld [vmem:[%s3651_s1] sm:$0xff] }
 0x1f3   : > { %1472 = vrot.lane.b32.xlu1 %v1379_v9, %s2484_s28  ;;  %1325 = vst.msk [vmem:[#allocation3 + $0x40] sm:$0xff] %vm1316_vm8, %v1237_v59  ;;  %2316 = vmatprep.mubr.msk.f32.mxu0 %vm1962_vm12, %v3516_v15 }
 0x1f4   : > { %1663 = vrot.lane.b32.xlu0 %v1571_v16, %s2485_s29 }
 0x1f5   : > { %v1271_v22 = vpop.permute.xlu1 %1270 }
 0x1f6   : > { %1342 = vst.msk [vmem:[#allocation3 + $0xc8] sm:$0xff] %vm1316_vm8, %v1271_v22  ;;  %v1463_v21 = vpop.permute.xlu0 %1462 }
 0x1f7   : > { %1440 = vrot.lane.b32.xlu1 %v1363_v30, %s2484_s28  ;;  %1535 = vst.msk [vmem:[#allocation3 + $0xc0] sm:$0xff] %vm1510_vm9, %v1463_v21 }
 0x1f8   : > { %1631 = vrot.lane.b32.xlu0 %v1555_v47, %s2485_s29 }
 0x1f9   : > { %v1239_v37 = vpop.permute.xlu1 %1238 }
 0x1fa   : > { %1326 = vst.msk [vmem:[#allocation3 + $0x48] sm:$0xff] %vm1316_vm8, %v1239_v37  ;;  %v1431_v44 = vpop.permute.xlu0 %1430 }
 0x1fb   : > { %1665 = vrot.lane.b32.xlu1 %v1572_v33, %s2485_s29  ;;  %1519 = vst.msk [vmem:[#allocation3 + $0x40] sm:$0xff] %vm1510_vm9, %v1431_v44 }
 0x1fc   : > { %1856 = vrot.lane.b32.xlu0 %v1764_v1, %s2486_s30 }
 0x1fd   : > { %v1465_v57 = vpop.permute.xlu1 %1464 }
 0x1fe   : > { %1536 = vst.msk [vmem:[#allocation3 + $0xc8] sm:$0xff] %vm1510_vm9, %v1465_v57  ;;  %v1656_v52 = vpop.permute.xlu0 %1655 }
 0x1ff   : > { %1633 = vrot.lane.b32.xlu1 %v1556_v49, %s2485_s29  ;;  %1728 = vst.msk [vmem:[#allocation3 + $0xc0] sm:$0xff] %vm1703_vm10, %v1656_v52 }
 0x200   : > { %1824 = vrot.lane.b32.xlu0 %v1748_v51, %s2486_s30 }
 0x201   : > { %v1433_v3 = vpop.permute.xlu1 %1432 }
 0x202   : > { %1520 = vst.msk [vmem:[#allocation3 + $0x48] sm:$0xff] %vm1510_vm9, %v1433_v3  ;;  %v1624_v53 = vpop.permute.xlu0 %1623 }
 0x203   : > { %1858 = vrot.lane.b32.xlu1 %v1765_v46, %s2486_s30  ;;  %1712 = vst.msk [vmem:[#allocation3 + $0x40] sm:$0xff] %vm1703_vm10, %v1624_v53 }
 0x204   : > { %701 = vrot.lane.b32.xlu0 %v3377_v18, %s2480_s14 }
 0x205   : > { %v1658_v56 = vpop.permute.xlu1 %1657 }
 0x206   : > { %1729 = vst.msk [vmem:[#allocation3 + $0xc8] sm:$0xff] %vm1703_vm10, %v1658_v56  ;;  %v1849_v11 = vpop.permute.xlu0 %1848 }
 0x207   : > { %1826 = vrot.lane.b32.xlu1 %v1749_v12, %s2486_s30  ;;  %1921 = vst.msk [vmem:[#allocation3 + $0xc0] sm:$0xff] %vm1896_vm11, %v1849_v11 }
 0x208   : > { %894 = vrot.lane.b32.xlu0 %v1378_v45, %s2481_s20  ;;  %v1750_v45 = vld [vmem:[#allocation2 + $0xda] sm:$0xff] }
 0x209   : > { %v1626_v20 = vpop.permute.xlu1 %1625 }
 0x20a   : > { %1713 = vst.msk [vmem:[#allocation3 + $0x48] sm:$0xff] %vm1703_vm10, %v1626_v20  ;;  %v1817_v60 = vpop.permute.xlu0 %1816 }
 0x20b   : > { %703 = vrot.lane.b32.xlu1 %v3387_v5, %s2480_s14  ;;  %1905 = vst.msk [vmem:[#allocation3 + $0x40] sm:$0xff] %vm1896_vm11, %v1817_v60  ;;  %s2414_s14 = scalar_lea.vmem %s2166_s9, 256 }
 0x20c   : > { %862 = vrot.lane.b32.xlu0 %v1362_v0, %s2481_s20  ;;  %p2415_p12 = scmp.ne.s32.totalorder %s2166_s9, %s2414_s14 }
 0x20d   : > { %v1851_v55 = vpop.permute.xlu1 %1850 }
 0x20e   : > { %1922 = vst.msk [vmem:[#allocation3 + $0xc8] sm:$0xff] %vm1896_vm11, %v1851_v55  ;;  %v694_v32 = vpop.permute.xlu0 %693  ;;  %v1953_v18 = vld [vmem:[#allocation3 + $0xc0] sm:$0xff]  ;;  %p2416_p13 = pnand %p2415_p12, %p2551_p5 }
 0x20f   : > { %896 = vrot.lane.b32.xlu1 %v1379_v9, %s2481_s20  ;;  %764 = vst.msk [vmem:[#allocation3 + $0xd0] sm:$0xff] %vm737_vm5, %v694_v32  ;;  %v1751_v9 = vld [vmem:[#allocation2 + $0xe2] sm:$0xff] }
 0x210   : > { %1087 = vrot.lane.b32.xlu0 %v1571_v16, %s2482_s22  ;;  %p2417_p0 = pneg %p2416_p13 }
 0x211   : > { %v1819_v17 = vpop.permute.xlu1 %1818 }
 0x212   : > { %1906 = vst.msk [vmem:[#allocation3 + $0x48] sm:$0xff] %vm1896_vm11, %v1819_v17  ;;  %v887_v28 = vpop.permute.xlu0 %886  ;;  %v1937_v42 = vld [vmem:[#allocation3 + $0x40] sm:$0xff] }
 0x213   : > { %864 = vrot.lane.b32.xlu1 %v1363_v30, %s2481_s20  ;;  %957 = vst.msk [vmem:[#allocation3 + $0xd0] sm:$0xff] %vm930_vm6, %v887_v28  ;;  %s2487_s20 = smov [#allocation4]  }
 0x214   : > { %1055 = vrot.lane.b32.xlu0 %v1555_v47, %s2482_s22 }
 0x215   : > { %v696_v63 = vpop.permute.xlu1 %695  ;;  %v1954_v41 = vld [vmem:[#allocation3 + $0xc8] sm:$0xff] }
 0x216   : > { %765 = vst.msk [vmem:[#allocation3 + $0xd8] sm:$0xff] %vm737_vm5, %v696_v63  ;;  %v2342_v29 = vpack.c.bf16 %v1954_v41, %v1953_v18  ;;  %v855_v31 = vpop.permute.xlu0 %854 }
 0x217   : > { %1089 = vrot.lane.b32.xlu1 %v1572_v33, %s2482_s22  ;;  %941 = vst.msk [vmem:[#allocation3 + $0x50] sm:$0xff] %vm930_vm6, %v855_v31 }
 0x218   : > { %2344 = vmatprep.subr.msk.bf16.mxu0 %vm3184_vm13, %v2342_v29  ;;  %1280 = vrot.lane.b32.xlu0 %v1764_v1, %s2483_s23 }
 0x219   : > { %v889_v5 = vpop.permute.xlu1 %888  ;;  %v1938_v25 = vld [vmem:[#allocation3 + $0x48] sm:$0xff] }
 0x21a   : > { %958 = vst.msk [vmem:[#allocation3 + $0xd8] sm:$0xff] %vm930_vm6, %v889_v5  ;;  %v2345_v8 = vpack.c.bf16 %v1938_v25, %v1937_v42  ;;  %v1080_v48 = vpop.permute.xlu0 %1079 }
 0x21b   : > { %1057 = vrot.lane.b32.xlu1 %v1556_v49, %s2482_s22  ;;  %1150 = vst.msk [vmem:[#allocation3 + $0xd0] sm:$0xff] %vm1123_vm7, %v1080_v48  ;;  %s2418_s22 = sshll.u32 %s2487_s20, 4  ;;  %s2419_s22 = int_to_ptr.vmem [resolvable:$false] %s2418_s22 }
 0x21c   : > { %2347 = vmatpush3.bf16.xpose.msk.msra.mxu0 %vm3184_vm13, %v2345_v8  ;;  %1248 = vrot.lane.b32.xlu0 %v1748_v51, %s2483_s23  ;;  %p2421_p1 = scmp.lt.s32.totalorder %s2166_s9, %s2419_s22 }
 0x21d   : > { %v857_v14 = vpop.permute.xlu1 %856 }
 0x21e   : > { %942 = vst.msk [vmem:[#allocation3 + $0x58] sm:$0xff] %vm930_vm6, %v857_v14  ;;  %v1048_v13 = vpop.permute.xlu0 %1047 }
 0x21f   : > { %1282 = vrot.lane.b32.xlu1 %v1765_v46, %s2483_s23  ;;  %1134 = vst.msk [vmem:[#allocation3 + $0x50] sm:$0xff] %vm1123_vm7, %v1048_v13 }
 0x220   : > { %1474 = vrot.lane.b32.xlu0 %v1380_v58, %s2484_s28 }
 0x221   : > { %v1082_v36 = vpop.permute.xlu1 %1081 }
 0x222   : > { %1151 = vst.msk [vmem:[#allocation3 + $0xd8] sm:$0xff] %vm1123_vm7, %v1082_v36  ;;  %v1273_v39 = vpop.permute.xlu0 %1272 }
 0x223   : > { %1250 = vrot.lane.b32.xlu1 %v1749_v12, %s2483_s23  ;;  %1343 = vst.msk [vmem:[#allocation3 + $0xd0] sm:$0xff] %vm1316_vm8, %v1273_v39  ;;  %s2420_s23 = scalar_lea.vmem %s2419_s22, 512 }
 0x224   : > { %1442 = vrot.lane.b32.xlu0 %v1364_v38, %s2484_s28  ;;  %p2422_p2 = scmp.lt.s32.totalorder %s2420_s23, %s2414_s14 }
 0x225   : > { %v1050_v62 = vpop.permute.xlu1 %1049 }
 0x226   : > { %1135 = vst.msk [vmem:[#allocation3 + $0x58] sm:$0xff] %vm1123_vm7, %v1050_v62  ;;  %v1241_v43 = vpop.permute.xlu0 %1240  ;;  %p2423_p3 = por %p2422_p2, %p2421_p1 }
 0x227   : > { %1476 = vrot.lane.b32.xlu1 %v1381_v61, %s2484_s28  ;;  %1327 = vst.msk [vmem:[#allocation3 + $0x50] sm:$0xff] %vm1316_vm8, %v1241_v43 }
 0x228   : > { %1667 = vrot.lane.b32.xlu0 %v1573_v40, %s2485_s29  ;;  %p2424_p4 = pnand %p2423_p3, %p2417_p0 }
 0x229   : > { %v1275_v10 = vpop.permute.xlu1 %1274 }
 0x22a   : > { %1344 = vst.msk [vmem:[#allocation3 + $0xd8] sm:$0xff] %vm1316_vm8, %v1275_v10  ;;  %v1467_v23 = vpop.permute.xlu0 %1466 }
 0x22b   : > { %1444 = vrot.lane.b32.xlu1 %v1365_v4, %s2484_s28  ;;  %1537 = vst.msk [vmem:[#allocation3 + $0xd0] sm:$0xff] %vm1510_vm9, %v1467_v23 }
 0x22c   : > { %1635 = vrot.lane.b32.xlu0 %v1557_v24, %s2485_s29 }
 0x22d   : > { %v1243_v27 = vpop.permute.xlu1 %1242 }
 0x22e   : > { %1328 = vst.msk [vmem:[#allocation3 + $0x58] sm:$0xff] %vm1316_vm8, %v1243_v27  ;;  %v1435_v35 = vpop.permute.xlu0 %1434 }
 0x22f   : > { %1669 = vrot.lane.b32.xlu1 %v1574_v26, %s2485_s29  ;;  %1521 = vst.msk [vmem:[#allocation3 + $0x50] sm:$0xff] %vm1510_vm9, %v1435_v35 }
 0x230   : > { %1860 = vrot.lane.b32.xlu0 %v1766_v34, %s2486_s30 }
 0x231   : > { %v1469_v6 = vpop.permute.xlu1 %1468 }
 0x232   : > { %1538 = vst.msk [vmem:[#allocation3 + $0xd8] sm:$0xff] %vm1510_vm9, %v1469_v6  ;;  %v1660_v7 = vpop.permute.xlu0 %1659 }
 0x233   : > { %1637 = vrot.lane.b32.xlu1 %v1558_v50, %s2485_s29  ;;  %1730 = vst.msk [vmem:[#allocation3 + $0xd0] sm:$0xff] %vm1703_vm10, %v1660_v7 }
 0x234   : > { %1828 = vrot.lane.b32.xlu0 %v1750_v45, %s2486_s30 }
 0x235   : > { %v1437_v0 = vpop.permute.xlu1 %1436 }
 0x236   : > { %1522 = vst.msk [vmem:[#allocation3 + $0x58] sm:$0xff] %vm1510_vm9, %v1437_v0  ;;  %v1628_v54 = vpop.permute.xlu0 %1627 }
 0x237   : > { %1862 = vrot.lane.b32.xlu1 %v1767_v2, %s2486_s30  ;;  %1714 = vst.msk [vmem:[#allocation3 + $0x50] sm:$0xff] %vm1703_vm10, %v1628_v54 }
 0x239   : > { %v1662_v16 = vpop.permute.xlu1 %1661 }
 0x23a   : > { %1731 = vst.msk [vmem:[#allocation3 + $0xd8] sm:$0xff] %vm1703_vm10, %v1662_v16  ;;  %v1853_v59 = vpop.permute.xlu0 %1852 }
 0x23b   : > { %1830 = vrot.lane.b32.xlu1 %v1751_v9, %s2486_s30  ;;  %1923 = vst.msk [vmem:[#allocation3 + $0xd0] sm:$0xff] %vm1896_vm11, %v1853_v59 }
 0x23d   : > { %v1630_v30 = vpop.permute.xlu1 %1629 }
 0x23e   : > { %1715 = vst.msk [vmem:[#allocation3 + $0x58] sm:$0xff] %vm1703_vm10, %v1630_v30  ;;  %v1821_v22 = vpop.permute.xlu0 %1820 }
 0x23f   : > { %1907 = vst.msk [vmem:[#allocation3 + $0x50] sm:$0xff] %vm1896_vm11, %v1821_v22 }
 0x241   : > { %v1855_v47 = vpop.permute.xlu1 %1854 }
 0x242   : > { %1924 = vst.msk [vmem:[#allocation3 + $0xd8] sm:$0xff] %vm1896_vm11, %v1855_v47  ;;  %v698_v21 = vpop.permute.xlu0 %697  ;;  %v1955_v1 = vld [vmem:[#allocation3 + $0xd0] sm:$0xff] }
 0x243   : > { %766 = vst.msk [vmem:[#allocation3 + $0xe0] sm:$0xff] %vm737_vm5, %v698_v21 }
 0x245   : > { %v1823_v33 = vpop.permute.xlu1 %1822 }
 0x246   : > { %1908 = vst.msk [vmem:[#allocation3 + $0x58] sm:$0xff] %vm1896_vm11, %v1823_v33  ;;  %v891_v37 = vpop.permute.xlu0 %890  ;;  %v1939_v52 = vld [vmem:[#allocation3 + $0x50] sm:$0xff] }
 0x247   : > { %959 = vst.msk [vmem:[#allocation3 + $0xe0] sm:$0xff] %vm930_vm6, %v891_v37 }
 0x249   : > { %v700_v44 = vpop.permute.xlu1 %699  ;;  %v1956_v49 = vld [vmem:[#allocation3 + $0xd8] sm:$0xff] }
 0x24a   : > { %767 = vst.msk [vmem:[#allocation3 + $0xe8] sm:$0xff] %vm737_vm5, %v700_v44  ;;  %v2348_v57 = vpack.c.bf16 %v1956_v49, %v1955_v1  ;;  %v859_v51 = vpop.permute.xlu0 %858 }
 0x24b   : > { %943 = vst.msk [vmem:[#allocation3 + $0x60] sm:$0xff] %vm930_vm6, %v859_v51 }
 0x24c   : > { %2350 = vmatprep.subr.msk.bf16.mxu0 %vm3184_vm13, %v2348_v57 }
 0x24d   : > { %v893_v46 = vpop.permute.xlu1 %892  ;;  %v1940_v3 = vld [vmem:[#allocation3 + $0x58] sm:$0xff] }
 0x24e   : > { %960 = vst.msk [vmem:[#allocation3 + $0xe8] sm:$0xff] %vm930_vm6, %v893_v46  ;;  %v2351_v53 = vpack.c.bf16 %v1940_v3, %v1939_v52  ;;  %v1084_v12 = vpop.permute.xlu0 %1083 }
 0x24f   : > { %1152 = vst.msk [vmem:[#allocation3 + $0xe0] sm:$0xff] %vm1123_vm7, %v1084_v12 }
 0x250   : > { %2353 = vmatpush3.bf16.xpose.msk.msra.mxu0 %vm3184_vm13, %v2351_v53 }
 0x251   : > { %v861_v56 = vpop.permute.xlu1 %860 }
 0x252   : > { %944 = vst.msk [vmem:[#allocation3 + $0x68] sm:$0xff] %vm930_vm6, %v861_v56  ;;  %v1052_v11 = vpop.permute.xlu0 %1051 }
 0x253   : > { %1136 = vst.msk [vmem:[#allocation3 + $0x60] sm:$0xff] %vm1123_vm7, %v1052_v11 }
 0x255   : > { %v1086_v20 = vpop.permute.xlu1 %1085 }
 0x256   : > { %1153 = vst.msk [vmem:[#allocation3 + $0xe8] sm:$0xff] %vm1123_vm7, %v1086_v20  ;;  %v1277_v60 = vpop.permute.xlu0 %1276 }
 0x257   : > { %1345 = vst.msk [vmem:[#allocation3 + $0xe0] sm:$0xff] %vm1316_vm8, %v1277_v60 }
 0x259   : > { %v1054_v55 = vpop.permute.xlu1 %1053 }
 0x25a   : > { %1137 = vst.msk [vmem:[#allocation3 + $0x68] sm:$0xff] %vm1123_vm7, %v1054_v55  ;;  %v1245_v32 = vpop.permute.xlu0 %1244 }
 0x25b   : > { %1329 = vst.msk [vmem:[#allocation3 + $0x60] sm:$0xff] %vm1316_vm8, %v1245_v32 }
 0x25d   : > { %v1279_v17 = vpop.permute.xlu1 %1278 }
 0x25e   : > { %1346 = vst.msk [vmem:[#allocation3 + $0xe8] sm:$0xff] %vm1316_vm8, %v1279_v17  ;;  %v1471_v28 = vpop.permute.xlu0 %1470 }
 0x25f   : > { %1539 = vst.msk [vmem:[#allocation3 + $0xe0] sm:$0xff] %vm1510_vm9, %v1471_v28 }
 0x261   : > { %v1247_v18 = vpop.permute.xlu1 %1246 }
 0x262   : > { %1330 = vst.msk [vmem:[#allocation3 + $0x68] sm:$0xff] %vm1316_vm8, %v1247_v18  ;;  %v1439_v63 = vpop.permute.xlu0 %1438 }
 0x263   : > { %1523 = vst.msk [vmem:[#allocation3 + $0x60] sm:$0xff] %vm1510_vm9, %v1439_v63 }
 0x265   : > { %v1473_v41 = vpop.permute.xlu1 %1472 }
 0x266   : > { %1540 = vst.msk [vmem:[#allocation3 + $0xe8] sm:$0xff] %vm1510_vm9, %v1473_v41  ;;  %v1664_v29 = vpop.permute.xlu0 %1663 }
 0x267   : > { %1732 = vst.msk [vmem:[#allocation3 + $0xe0] sm:$0xff] %vm1703_vm10, %v1664_v29 }
 0x269   : > { %v1441_v31 = vpop.permute.xlu1 %1440 }
 0x26a   : > { %1524 = vst.msk [vmem:[#allocation3 + $0x68] sm:$0xff] %vm1510_vm9, %v1441_v31  ;;  %v1632_v42 = vpop.permute.xlu0 %1631 }
 0x26b   : > { %1716 = vst.msk [vmem:[#allocation3 + $0x60] sm:$0xff] %vm1703_vm10, %v1632_v42 }
 0x26d   : > { %v1666_v5 = vpop.permute.xlu1 %1665 }
 0x26e   : > { %1733 = vst.msk [vmem:[#allocation3 + $0xe8] sm:$0xff] %vm1703_vm10, %v1666_v5  ;;  %v1857_v25 = vpop.permute.xlu0 %1856 }
 0x26f   : > { %1925 = vst.msk [vmem:[#allocation3 + $0xe0] sm:$0xff] %vm1896_vm11, %v1857_v25 }
 0x271   : > { %v1634_v8 = vpop.permute.xlu1 %1633 }
 0x272   : > { %1717 = vst.msk [vmem:[#allocation3 + $0x68] sm:$0xff] %vm1703_vm10, %v1634_v8  ;;  %v1825_v48 = vpop.permute.xlu0 %1824 }
 0x273   : > { %1909 = vst.msk [vmem:[#allocation3 + $0x60] sm:$0xff] %vm1896_vm11, %v1825_v48 }
 0x275   : > { %v1859_v14 = vpop.permute.xlu1 %1858 }
 0x276   : > { %1926 = vst.msk [vmem:[#allocation3 + $0xe8] sm:$0xff] %vm1896_vm11, %v1859_v14  ;;  %v702_v58 = vpop.permute.xlu0 %701  ;;  %v1957_v38 = vld [vmem:[#allocation3 + $0xe0] sm:$0xff] }
 0x277   : > { %768 = vst.msk [vmem:[#allocation3 + $0xf0] sm:$0xff] %vm737_vm5, %v702_v58 }
 0x279   : > { %v1827_v13 = vpop.permute.xlu1 %1826 }
 0x27a   : > { %1910 = vst.msk [vmem:[#allocation3 + $0x68] sm:$0xff] %vm1896_vm11, %v1827_v13  ;;  %v895_v36 = vpop.permute.xlu0 %894  ;;  %v1941_v43 = vld [vmem:[#allocation3 + $0x60] sm:$0xff] }
 0x27b   : > { %961 = vst.msk [vmem:[#allocation3 + $0xf0] sm:$0xff] %vm930_vm6, %v895_v36 }
 0x27d   : > { %v704_v39 = vpop.permute.xlu1 %703  ;;  %v1958_v61 = vld [vmem:[#allocation3 + $0xe8] sm:$0xff] }
 0x27e   : > { %769 = vst.msk [vmem:[#allocation3 + $0xf8] sm:$0xff] %vm737_vm5, %v704_v39  ;;  %v2354_v62 = vpack.c.bf16 %v1958_v61, %v1957_v38  ;;  %v863_v40 = vpop.permute.xlu0 %862 }
 0x27f   : > { %945 = vst.msk [vmem:[#allocation3 + $0x70] sm:$0xff] %vm930_vm6, %v863_v40 }
 0x280   : > { %2356 = vmatprep.subr.msk.bf16.mxu0 %vm3184_vm13, %v2354_v62 }
 0x281   : > { %v897_v4 = vpop.permute.xlu1 %896  ;;  %v1942_v10 = vld [vmem:[#allocation3 + $0x68] sm:$0xff] }
 0x282   : > { %962 = vst.msk [vmem:[#allocation3 + $0xf8] sm:$0xff] %vm930_vm6, %v897_v4  ;;  %v2357_v24 = vpack.c.bf16 %v1942_v10, %v1941_v43  ;;  %v1088_v23 = vpop.permute.xlu0 %1087 }
 0x283   : > { %1154 = vst.msk [vmem:[#allocation3 + $0xf0] sm:$0xff] %vm1123_vm7, %v1088_v23 }
 0x284   : > { %2359 = vmatpush3.bf16.xpose.msk.msra.mxu0 %vm3184_vm13, %v2357_v24 }
 0x285   : > { %v865_v26 = vpop.permute.xlu1 %864 }
 0x286   : > { %946 = vst.msk [vmem:[#allocation3 + $0x78] sm:$0xff] %vm930_vm6, %v865_v26  ;;  %v1056_v27 = vpop.permute.xlu0 %1055 }
 0x287   : > { %1138 = vst.msk [vmem:[#allocation3 + $0x70] sm:$0xff] %vm1123_vm7, %v1056_v27 }
 0x289   : > { %v1090_v34 = vpop.permute.xlu1 %1089 }
 0x28a   : > { %1155 = vst.msk [vmem:[#allocation3 + $0xf8] sm:$0xff] %vm1123_vm7, %v1090_v34  ;;  %v1281_v35 = vpop.permute.xlu0 %1280 }
 0x28b   : > { %1347 = vst.msk [vmem:[#allocation3 + $0xf0] sm:$0xff] %vm1316_vm8, %v1281_v35 }
 0x28d   : > { %v1058_v50 = vpop.permute.xlu1 %1057 }
 0x28e   : > { %1139 = vst.msk [vmem:[#allocation3 + $0x78] sm:$0xff] %vm1123_vm7, %v1058_v50  ;;  %v1249_v6 = vpop.permute.xlu0 %1248 }
 0x28f   : > { %1331 = vst.msk [vmem:[#allocation3 + $0x70] sm:$0xff] %vm1316_vm8, %v1249_v6 }
 0x291   : > { %v1283_v45 = vpop.permute.xlu1 %1282 }
 0x292   : > { %1348 = vst.msk [vmem:[#allocation3 + $0xf8] sm:$0xff] %vm1316_vm8, %v1283_v45  ;;  %v1475_v7 = vpop.permute.xlu0 %1474 }
 0x293   : > { %1541 = vst.msk [vmem:[#allocation3 + $0xf0] sm:$0xff] %vm1510_vm9, %v1475_v7 }
 0x295   : > { %v1251_v2 = vpop.permute.xlu1 %1250 }
 0x296   : > { %1332 = vst.msk [vmem:[#allocation3 + $0x78] sm:$0xff] %vm1316_vm8, %v1251_v2  ;;  %v1443_v0 = vpop.permute.xlu0 %1442 }
 0x297   : > { %1525 = vst.msk [vmem:[#allocation3 + $0x70] sm:$0xff] %vm1510_vm9, %v1443_v0 }
 0x299   : > { %v1477_v54 = vpop.permute.xlu1 %1476 }
 0x29a   : > { %1542 = vst.msk [vmem:[#allocation3 + $0xf8] sm:$0xff] %vm1510_vm9, %v1477_v54  ;;  %v1668_v9 = vpop.permute.xlu0 %1667 }
 0x29b   : > { %1734 = vst.msk [vmem:[#allocation3 + $0xf0] sm:$0xff] %vm1703_vm10, %v1668_v9 }
 0x29d   : > { %v1445_v16 = vpop.permute.xlu1 %1444 }
 0x29e   : > { %1526 = vst.msk [vmem:[#allocation3 + $0x78] sm:$0xff] %vm1510_vm9, %v1445_v16  ;;  %v1636_v59 = vpop.permute.xlu0 %1635 }
 0x29f   : > { %1718 = vst.msk [vmem:[#allocation3 + $0x70] sm:$0xff] %vm1703_vm10, %v1636_v59 }
 0x2a1   : > { %v1670_v30 = vpop.permute.xlu1 %1669 }
 0x2a2   : > { %1735 = vst.msk [vmem:[#allocation3 + $0xf8] sm:$0xff] %vm1703_vm10, %v1670_v30  ;;  %v1861_v22 = vpop.permute.xlu0 %1860 }
 0x2a3   : > { %1927 = vst.msk [vmem:[#allocation3 + $0xf0] sm:$0xff] %vm1896_vm11, %v1861_v22 }
 0x2a5   : > { %v1638_v47 = vpop.permute.xlu1 %1637 }
 0x2a6   : > { %1719 = vst.msk [vmem:[#allocation3 + $0x78] sm:$0xff] %vm1703_vm10, %v1638_v47  ;;  %v1829_v21 = vpop.permute.xlu0 %1828 }
 0x2a7   : > { %1911 = vst.msk [vmem:[#allocation3 + $0x70] sm:$0xff] %vm1896_vm11, %v1829_v21 }
 0x2a9   : > { %v1863_v33 = vpop.permute.xlu1 %1862 }
 0x2aa   : > { %1928 = vst.msk [vmem:[#allocation3 + $0xf8] sm:$0xff] %vm1896_vm11, %v1863_v33  ;;  %v1959_v1 = vld [vmem:[#allocation3 + $0xf0] sm:$0xff] }
 0x2ad   : > { %v1831_v37 = vpop.permute.xlu1 %1830 }
 0x2ae   : > { %1912 = vst.msk [vmem:[#allocation3 + $0x78] sm:$0xff] %vm1896_vm11, %v1831_v37  ;;  %v1943_v57 = vld [vmem:[#allocation3 + $0x70] sm:$0xff] }
 0x2b1   : > { %v1960_v44 = vld [vmem:[#allocation3 + $0xf8] sm:$0xff] }
 0x2b2   : > { %v2360_v49 = vpack.c.bf16 %v1960_v44, %v1959_v1 }
 0x2b4   : > { %2362 = vmatprep.subr.msk.bf16.mxu0 %vm3184_vm13, %v2360_v49 }
 0x2b5   : > { %v1944_v51 = vld [vmem:[#allocation3 + $0x78] sm:$0xff] }
 0x2b6   : > { %v2363_v52 = vpack.c.bf16 %v1944_v51, %v1943_v57 }
 0x2b8   : > { %2365 = vmatpush3.bf16.xpose.msk.msra.mxu0 %vm3184_vm13, %v2363_v52 }
 0x2bf   : > { %2317 = vmatmul.mubr.msk.f32.vlgmr.msra.gmra.mrb[0].mxu0 %vm1962_vm12, %v3516_v15 }
 0x392   : > { %v2128_v46 = vpop.f32.mrb[0].mxu0 }
 0x393   : > { %2133 = vst [vmem:[%s2571_s8] sm:$0xff] %v2128_v46  ;;  %v2143_v3 = vmul.f32 %v2128_v46, %v2128_v46  ;;  %v2130_v53 = vpop.f32.mrb[1].mxu0 }
 0x394   : > { %2134 = vst [vmem:[%s2571_s8 + $0x8] sm:$0xff] %v2130_v53  ;;  %v2136_v12 = vadd.f32 %v2130_v53, %v2128_v46  ;;  %v2144_v56 = vmul.f32 %v2130_v53, %v2130_v53 }
 0x396   : > { %v2145_v11 = vadd.f32 %v2144_v56, %v2143_v3  ;;  %2137 = vadd.xlane.f32.xlu0 %v2136_v12 }
 0x398   : > { %2146 = vadd.xlane.f32.xlu1 %v2145_v11 }
 0x399   : > { %2427 = shalt.err (!%p2424_p4)
}
 0x39a   : > { %s2428_s19 = scalar_lea.hbm %s3600_s12, 256  ;;  %s2432_s28 = scalar_lea.hbm %s3652_s2, 512 }
 0x39b   : > { %p2429_p7 = scmp.ne.s32.totalorder %s3600_s12, %s2428_s19  ;;  %p2433_p10 = scmp.lt.u32.totalorder %s3600_s12, %s3652_s2 }
 0x39c   : > { %p2434_p11 = scmp.lt.u32.totalorder %s2432_s28, %s2428_s19  ;;  %p2436_p13 = scmp.lt.u32.totalorder %s2428_s19, %s3600_s12 }
 0x39d   : > { %p2430_p8 = pnand %p2429_p7, %p2551_p5 }
 0x39e   : > { %p2435_p12 = por %p2434_p11, %p2433_p10 }
 0x39f   : > { %p2431_p9 = pneg %p2430_p8 }
 0x3a0   : > { %p2437_p0 = por %p2436_p13, %p2435_p12 }
 0x3a2   : > { %p2438_p1 = pnand %p2437_p0, %p2431_p9 }
 0x3a4   : > { %2441 = shalt.err (!%p2438_p1)
}
 0x3a5   : > { %2366 = dma.vmem_to_hbm [thread:$0]  (%p2551_p5), %s2166_s9, 256, %s3600_s12, %s2151_s13   ;;  %v2135_v19 = vld [vmem:[%s3653_s3] sm:$0xff]  ;;  %vm2140_vm14 = vcmask 7168  }
 0x3a6   : > { %v2142_v20 = vld [vmem:[%s3654_s4] sm:$0xff] }
 0x423   : > { %v2138_v15 = vpop.xlane.xlu0 %2137 }
 0x424   : > { %v2139_v60 = vadd.f32 %v2138_v15, %v2135_v19 }
 0x425   : > { %v2147_v55 = vpop.xlane.xlu1 %2146 }
 0x426   : > { %2141 = vst.msk [vmem:[%s3653_s3] sm:$0xff] %vm2140_vm14, %v2139_v60  ;;  %v2148_v32 = vadd.f32 %v2147_v55, %v2142_v20 }
 0x428   : > { %2149 = vst.msk [vmem:[%s3654_s4] sm:$0xff] %vm2140_vm14, %v2148_v32 }
 0x429 PF: > { %p2372_p5 = scmp.ge.s32.totalorder %s2476_s18, 2  ;;  %s2189_s9 = sand.u32 1, %s2464_s15  }
 0x42a   : > { %s2190_s12 = scalar_lea.sflag [#allocation5], %s2189_s9 }
 0x42b   : > { %p2369_p2 = pnand %p2372_p5, %p2555_p6 }
 0x42d   : > { %2459 = dma.done.wait (!%p2369_p2), %s2190_s12, 256  }
 0x42e   : > { %2461 = vsyncadd (!%p2369_p2), %s2190_s12, 4294967040  ;;  %p15_p3 = scmp.ge.s32.totalorder %s2538_s21, 4   ;;  %s3659_s15 = smov %s2468_s16 }
 0x42f   : > { %s3660_s16 = smov %s2472_s17  ;;  %s3661_s17 = smov %s2549_s24 }
 0x430   : > { %s3662_s18 = smov %s2538_s21  ;;  %17 = sbr.rel (!%p15_p3) target bundleno = 3 (0x3), region = 85 }
 0x437   :  { %2195 = vsyncpa [#allocation5], 1 }
 0x438   :  { %2197 = vsyncpa [#allocation5 + $0x1], 1 }

</bundles_post_ra>
